<compile_context>
chip_gen: v5e
topology: v5e:2x2
jax: 0.10.0
libtpu: 0.0.40
codegen_flags: <defaults>
</compile_context>

<pallas_src>
import math
from functools import partial

import jax
import jax.numpy as jnp
from jax.experimental import pallas as pl
from jax.experimental.pallas import tpu as pltpu


def _encoder_math(x2d, we, be, g, bt, wqkv, bqkv, wo, bo,
                  w1, b1, w2, b2, whp, bhp, *,
                  L, H, L_valid, head_batched, approx_recip):
    """Forward math on plain arrays for one batch block.

    x2d: (bn*L, P) bf16, rows batch-major / seq-minor (row = n*L + l).
    Matmul operands are bf16, accumulation and element-wise math (LayerNorm,
    softmax, residuals) stay float32.  Used both inside the Pallas kernel and
    as the pure-JAX reference (approx_recip=False -> exact division).
    """
    f32 = jnp.float32
    bf16 = jnp.bfloat16

    Tb = x2d.shape[0]
    bn = Tb // L
    D = wo.shape[0]
    hd = D // H

    def layernorm(t):
        mu = jnp.mean(t, axis=-1, keepdims=True)
        var = jnp.mean((t - mu) ** 2, axis=-1, keepdims=True)
        return (t - mu) * jax.lax.rsqrt(var + 1e-5) * g + bt

    def softmax_rows(s):
        # Mask padded key positions (only when L was padded up to a multiple of 8).
        if L_valid != L:
            kid = jax.lax.broadcasted_iota(jnp.int32, s.shape, s.ndim - 1)
            s = jnp.where(kid < L_valid, s, -1e30)
        s = s - jnp.max(s, axis=-1, keepdims=True)
        p = jnp.exp(s)
        denom = jnp.sum(p, axis=-1, keepdims=True)
        if approx_recip:
            return p * pl.reciprocal(denom, approx=True)   # EUP slot, off the VALU
        return p / denom

    # Patch embedding (nn.Linear): bf16 MXU matmul, f32 accumulate.
    emb = jnp.dot(x2d, we, preferred_element_type=f32) + be                   # (Tb, D)

    # --- TransformerEncoder (pre-norm, shared LayerNorm) ---
    xn = layernorm(emb)
    # Fused Q/K/V projection (attention scale already folded into Q cols/bias).
    qkv = jnp.dot(xn.astype(bf16), wqkv, preferred_element_type=f32) + bqkv   # (Tb, 3D)

    if head_batched:
        # Head-batched attention: one contraction over all (batch, head) pairs.
        q = qkv[:, 0 * D:1 * D].astype(bf16).reshape(bn, L, H, hd)
        k = qkv[:, 1 * D:2 * D].astype(bf16).reshape(bn, L, H, hd)
        v = qkv[:, 2 * D:3 * D].astype(bf16).reshape(bn, L, H, hd)
        s = jnp.einsum('blhd,bmhd->bhlm', q, k,
                       preferred_element_type=f32)                            # (bn,H,L,L)
        p = softmax_rows(s)
        o = jnp.einsum('bhlm,bmhd->blhd', p.astype(bf16), v,
                       preferred_element_type=f32)                            # (bn,L,H,hd)
        attn = o.reshape(Tb, D)
    else:
        # Fallback: static per-head loop, batched over the batch-block.
        q = qkv[:, 0 * D:1 * D].reshape(bn, L, D)
        k = qkv[:, 1 * D:2 * D].reshape(bn, L, D)
        v = qkv[:, 2 * D:3 * D].reshape(bn, L, D)
        head_outs = []
        for h in range(H):
            sl = slice(h * hd, (h + 1) * hd)
            qh = q[:, :, sl].astype(bf16)
            kh = k[:, :, sl].astype(bf16)
            vh = v[:, :, sl].astype(bf16)
            s = jnp.einsum('bld,bmd->blm', qh, kh, preferred_element_type=f32)
            p = softmax_rows(s)
            head_outs.append(jnp.einsum('blm,bmd->bld', p.astype(bf16), vh,
                                        preferred_element_type=f32))
        attn = jnp.concatenate(head_outs, axis=-1).reshape(Tb, D)

    attn = jnp.dot(attn.astype(bf16), wo, preferred_element_type=f32) + bo    # out_proj

    _x = emb + attn                                                           # residual 1
    x2 = layernorm(_x)
    h1 = jnp.maximum(jnp.dot(x2.astype(bf16), w1, preferred_element_type=f32) + b1, 0.0)
    h2 = jnp.maximum(jnp.dot(h1.astype(bf16), w2, preferred_element_type=f32) + b2, 0.0)
    enc = _x + h2                                                             # residual 2

    # mlp_head, zero-padded to a lane-dense (multiple-of-128) output width.
    return jnp.dot(enc.astype(bf16), whp, preferred_element_type=f32) + bhp   # (Tb, CP)


def _vit_kernel(*refs, L, H, L_valid, n_params, head_batched):
    x_ref = refs[0]
    param_refs = refs[1:1 + n_params]
    out_ref = refs[1 + n_params]

    xb = x_ref[...]                                   # (bn, L, P) bf16
    bn = xb.shape[0]
    x2d = xb.reshape(bn * L, xb.shape[2])
    params = [r[...] for r in param_refs]
    out2d = _encoder_math(x2d, *params, L=L, H=H, L_valid=L_valid,
                          head_batched=head_batched, approx_recip=True)
    out_ref[...] = out2d.reshape(bn, L, out2d.shape[-1]).astype(out_ref.dtype)


def prepare_params(params, *, n_heads):
    """Host-side preprocessing: fuse QKV (scale folded into Q), cast matmul
    weights to bf16, zero-pad the classifier head to a 128-multiple width."""
    (we, be, g, bt, wq, bq, wk, bk, wv, bv, wo, bo,
     w1, b1, w2, b2, wh, bh) = params
    D = we.shape[1]
    hd = D // n_heads
    scale = 1.0 / math.sqrt(hd)

    wqkv = jnp.concatenate([wq * scale, wk, wv], axis=1)          # (D, 3D)
    bqkv = jnp.concatenate([bq * scale, bk, bv], axis=1)          # (1, 3D)

    C = wh.shape[1]
    CP = ((C + 127) // 128) * 128                                 # lane-dense width
    whp = jnp.zeros((D, CP), jnp.float32).at[:, :C].set(wh)
    bhp = jnp.zeros((1, CP), jnp.float32).at[:, :C].set(bh)

    bf = lambda a: a.astype(jnp.bfloat16)
    return (bf(we), be, g, bt, bf(wqkv), bqkv, bf(wo), bo,
            bf(w1), b1, bf(w2), b2, bf(whp), bhp)


def _resident_spec(arr, single_buffer):
    """BlockSpec for a VMEM-resident parameter (constant index_map).
    single_buffer=True skips the default double-buffering (the block never
    changes, so one buffer suffices and the second would only waste VMEM)."""
    nd = arr.ndim
    index_map = lambda i, _nd=nd: (0,) * _nd
    if single_buffer:
        return pl.BlockSpec(arr.shape, index_map, pipeline_mode=pl.Buffered(1))
    return pl.BlockSpec(arr.shape, index_map)


def _chip_config():
    """Generation-aware (vmem_limit_bytes, target_rows_per_block, tensorcores)."""
    try:
        kind = jax.devices()[0].device_kind.lower()
    except Exception:  # pragma: no cover
        kind = ""
    if "v7" in kind or "7x" in kind:
        # 64 MiB VMEM / TC, 2 TCs: small blocks, leave room for f32 intermediates.
        return 44 * 1024 * 1024, 256, 2
    if "v6" in kind or "lite" in kind or "v5e" in kind:
        # v5e / v6e: 128 MiB VMEM, single TC: one big block, high limit.
        return 96 * 1024 * 1024, 1024, 1
    if "v5" in kind or "v4" in kind:
        # v4 / v5p: 128 MiB VMEM, megacore.
        return 80 * 1024 * 1024, 512, 2
    return 32 * 1024 * 1024, 512, 2   # unknown: conservative


def _pick_block_n(N, L, *, target_rows, num_cores):
    """Largest batch block that divides N and keeps <= target_rows tokens per
    block.  On megacore chips also prefer >=2 grid steps per TensorCore so the
    per-core input/output DMA is pipelined; single-TC chips take one big block
    (a serial grid brings no parallelism, only per-step overhead)."""
    divisors = [d for d in range(1, N + 1) if N % d == 0]
    fits = [d for d in divisors if d * L <= target_rows] or [1]
    if num_cores > 1:
        for min_steps in (2 * num_cores, num_cores, 1):
            ok = [d for d in fits if N // d >= min_steps]
            if ok:
                return max(ok)
    return max(fits)


def vit_forward_pallas(x, params, *, n_heads, block_n=None):
    """x: (L, N, P) float32, seq-first like PyTorch. Returns (L, N, n_classes)."""
    L, N, P = x.shape
    C = params[-2].shape[1]                     # wh: (D, C)
    prep = prepare_params(params, n_heads=n_heads)
    CP = prep[-1].shape[-1]

    vmem_limit, target_rows, n_cores = _chip_config()
    Lp = ((L + 7) // 8) * 8                     # sublane-aligned sequence length
    bn = (_pick_block_n(N, Lp, target_rows=target_rows, num_cores=n_cores)
          if block_n is None else block_n)
    assert N % bn == 0, (N, bn)

    # Batch-major layout (N, L, P): the grid tiles the batch dimension; every
    # block sees the full (padded) sequence length (attention needs all of it).
    x_nl = jnp.transpose(x, (1, 0, 2)).astype(jnp.bfloat16)
    if Lp != L:
        x_nl = jnp.pad(x_nl, ((0, 0), (0, Lp - L), (0, 0)))

    def build_and_run(head_batched, single_buffer_weights):
        kernel = partial(_vit_kernel, L=Lp, H=n_heads, L_valid=L,
                         n_params=len(prep), head_batched=head_batched)
        in_specs = ([pl.BlockSpec((bn, Lp, P), lambda i: (i, 0, 0))]
                    + [_resident_spec(p, single_buffer_weights) for p in prep])
        out = pl.pallas_call(
            kernel,
            out_shape=jax.ShapeDtypeStruct((N, Lp, CP), jnp.bfloat16),
            grid=(N // bn,),
            in_specs=in_specs,
            out_specs=pl.BlockSpec((bn, Lp, CP), lambda i: (i, 0, 0)),
            compiler_params=pltpu.CompilerParams(
                dimension_semantics=("parallel",),      # shard batch across TCs
                vmem_limit_bytes=vmem_limit,
            ),
        )(x_nl, *prep)
        return jax.block_until_ready(out)

    # Preferred config first (head-batched attention, single-buffered weights);
    # gracefully degrade if the installed Mosaic rejects either feature.
    out, last_err = None, None
    for hb, sb in ((True, True), (True, False), (False, True), (False, False)):
        try:
            out = build_and_run(hb, sb)
            break
        except Exception as e:                  # pragma: no cover - fallback
            last_err = e
    if out is None:
        raise last_err

    out = out[:, :L, :C].astype(jnp.float32)
    return jnp.transpose(out, (1, 0, 2))        # (L, N, C)


def init_params(key, p_size, channels, dim, n_classes):
    P = p_size * p_size * channels
    ks = jax.random.split(key, 12)
    s = 0.05

    def w(k, shape):
        return jax.random.normal(k, shape, jnp.float32) * s

    we = w(ks[0], (P, dim));        be = jnp.zeros((1, dim), jnp.float32)
    g = jnp.ones((1, dim), jnp.float32)
    bt = jnp.zeros((1, dim), jnp.float32)
    wq = w(ks[1], (dim, dim));      bq = w(ks[2], (1, dim))
    wk = w(ks[3], (dim, dim));      bk = w(ks[4], (1, dim))
    wv = w(ks[5], (dim, dim));      bv = w(ks[6], (1, dim))
    wo = w(ks[7], (dim, dim));      bo = jnp.zeros((1, dim), jnp.float32)
    w1 = w(ks[8], (dim, 4 * dim));  b1 = jnp.zeros((1, 4 * dim), jnp.float32)
    w2 = w(ks[9], (4 * dim, dim));  b2 = jnp.zeros((1, dim), jnp.float32)
    wh = w(ks[10], (dim, n_classes)); bh = w(ks[11], (1, n_classes))
    return (we, be, g, bt, wq, bq, wk, bk, wv, bv, wo, bo, w1, b1, w2, b2, wh, bh)


if __name__ == "__main__":
    # Small-shape instantiation consistent with the module:
    # ViT(p_size=4, channels=2, dim=32, n_heads=4, n_classes=16); seq=8, batch=2.
    p_size, channels, dim, n_heads, n_classes = 4, 2, 32, 4, 16
    L, N = 8, 2

    key = jax.random.PRNGKey(0)
    kx, kp = jax.random.split(key)
    x = jax.random.normal(kx, (L, N, p_size * p_size * channels), jnp.float32)
    params = init_params(kp, p_size, channels, dim, n_classes)

    out = vit_forward_pallas(x, params, n_heads=n_heads)
    out = jax.block_until_ready(out)
    assert out.shape == (L, N, n_classes)

    # Pure-JAX reference using the identical (bf16-weight, fused-QKV) math,
    # exact softmax division, rounded to the kernel's bf16 output dtype.
    prep = prepare_params(params, n_heads=n_heads)
    CP = prep[-1].shape[-1]
    x_nl = jnp.transpose(x, (1, 0, 2)).astype(jnp.bfloat16)
    ref2d = _encoder_math(x_nl.reshape(N * L, -1), *prep,
                          L=L, H=n_heads, L_valid=L,
                          head_batched=False, approx_recip=False)
    ref = ref2d.reshape(N, L, CP)[:, :, :n_classes]
    ref = ref.astype(jnp.bfloat16).astype(jnp.float32)
    ref = jnp.transpose(ref, (1, 0, 2))
    err = float(jnp.max(jnp.abs(out - ref)))
    assert jnp.allclose(out, ref, rtol=2e-2, atol=2e-2), err
    print("KERNEL_OK")
</pallas_src>

<mosaic_0001>
module attributes {stable_mosaic.version = 11 : i64} {
  func.func @_vit_kernel(%arg0: i32, %arg1: memref<1x8x32xbf16, #tpu.memory_space<vmem>>, %arg2: memref<32x32xbf16, #tpu.memory_space<vmem>>, %arg3: memref<1x32xf32, #tpu.memory_space<vmem>>, %arg4: memref<1x32xf32, #tpu.memory_space<vmem>>, %arg5: memref<1x32xf32, #tpu.memory_space<vmem>>, %arg6: memref<32x96xbf16, #tpu.memory_space<vmem>>, %arg7: memref<1x96xf32, #tpu.memory_space<vmem>>, %arg8: memref<32x32xbf16, #tpu.memory_space<vmem>>, %arg9: memref<1x32xf32, #tpu.memory_space<vmem>>, %arg10: memref<32x128xbf16, #tpu.memory_space<vmem>>, %arg11: memref<1x128xf32, #tpu.memory_space<vmem>>, %arg12: memref<128x32xbf16, #tpu.memory_space<vmem>>, %arg13: memref<1x32xf32, #tpu.memory_space<vmem>>, %arg14: memref<32x128xbf16, #tpu.memory_space<vmem>>, %arg15: memref<1x128xf32, #tpu.memory_space<vmem>>, %arg16: memref<1x8x128xbf16, #tpu.memory_space<vmem>>) attributes {dimension_semantics = [#tpu.dimension_semantics<parallel>], iteration_bounds = array<i64: 2>, scalar_prefetch = 0 : i64, scratch_operands = 0 : i64, tpu.core_type = #tpu.core_type<tc>, window_params = [{transform_indices = @transform_0, window_bounds = array<i64: 1, 8, 32>}, {pipeline_mode = #tpu.pipeline_mode<synchronous>, transform_indices = @transform_1, window_bounds = array<i64: 32, 32>}, {pipeline_mode = #tpu.pipeline_mode<synchronous>, transform_indices = @transform_2, window_bounds = array<i64: 1, 32>}, {pipeline_mode = #tpu.pipeline_mode<synchronous>, transform_indices = @transform_3, window_bounds = array<i64: 1, 32>}, {pipeline_mode = #tpu.pipeline_mode<synchronous>, transform_indices = @transform_4, window_bounds = array<i64: 1, 32>}, {pipeline_mode = #tpu.pipeline_mode<synchronous>, transform_indices = @transform_5, window_bounds = array<i64: 32, 96>}, {pipeline_mode = #tpu.pipeline_mode<synchronous>, transform_indices = @transform_6, window_bounds = array<i64: 1, 96>}, {pipeline_mode = #tpu.pipeline_mode<synchronous>, transform_indices = @transform_7, window_bounds = array<i64: 32, 32>}, {pipeline_mode = #tpu.pipeline_mode<synchronous>, transform_indices = @transform_8, window_bounds = array<i64: 1, 32>}, {pipeline_mode = #tpu.pipeline_mode<synchronous>, transform_indices = @transform_9, window_bounds = array<i64: 32, 128>}, {pipeline_mode = #tpu.pipeline_mode<synchronous>, transform_indices = @transform_10, window_bounds = array<i64: 1, 128>}, {pipeline_mode = #tpu.pipeline_mode<synchronous>, transform_indices = @transform_11, window_bounds = array<i64: 128, 32>}, {pipeline_mode = #tpu.pipeline_mode<synchronous>, transform_indices = @transform_12, window_bounds = array<i64: 1, 32>}, {pipeline_mode = #tpu.pipeline_mode<synchronous>, transform_indices = @transform_13, window_bounds = array<i64: 32, 128>}, {pipeline_mode = #tpu.pipeline_mode<synchronous>, transform_indices = @transform_14, window_bounds = array<i64: 1, 128>}, {transform_indices = @transform_15, window_bounds = array<i64: 1, 8, 128>}]} {
    %c0 = arith.constant 0 : index
    %c0_0 = arith.constant 0 : index
    %c0_1 = arith.constant 0 : index
    %0 = vector.load %arg1[%c0, %c0_0, %c0_1] : memref<1x8x32xbf16, #tpu.memory_space<vmem>>, vector<1x8x32xbf16>
    %1 = vector.shape_cast %0 : vector<1x8x32xbf16> to vector<8x32xbf16>
    %c0_2 = arith.constant 0 : index
    %c0_3 = arith.constant 0 : index
    %2 = vector.load %arg2[%c0_2, %c0_3] : memref<32x32xbf16, #tpu.memory_space<vmem>>, vector<32x32xbf16>
    %c0_4 = arith.constant 0 : index
    %c0_5 = arith.constant 0 : index
    %3 = vector.load %arg3[%c0_4, %c0_5] : memref<1x32xf32, #tpu.memory_space<vmem>>, vector<1x32xf32>
    %c0_6 = arith.constant 0 : index
    %c0_7 = arith.constant 0 : index
    %4 = vector.load %arg4[%c0_6, %c0_7] : memref<1x32xf32, #tpu.memory_space<vmem>>, vector<1x32xf32>
    %c0_8 = arith.constant 0 : index
    %c0_9 = arith.constant 0 : index
    %5 = vector.load %arg5[%c0_8, %c0_9] : memref<1x32xf32, #tpu.memory_space<vmem>>, vector<1x32xf32>
    %c0_10 = arith.constant 0 : index
    %c0_11 = arith.constant 0 : index
    %6 = vector.load %arg6[%c0_10, %c0_11] : memref<32x96xbf16, #tpu.memory_space<vmem>>, vector<32x96xbf16>
    %c0_12 = arith.constant 0 : index
    %c0_13 = arith.constant 0 : index
    %7 = vector.load %arg7[%c0_12, %c0_13] : memref<1x96xf32, #tpu.memory_space<vmem>>, vector<1x96xf32>
    %c0_14 = arith.constant 0 : index
    %c0_15 = arith.constant 0 : index
    %8 = vector.load %arg8[%c0_14, %c0_15] : memref<32x32xbf16, #tpu.memory_space<vmem>>, vector<32x32xbf16>
    %c0_16 = arith.constant 0 : index
    %c0_17 = arith.constant 0 : index
    %9 = vector.load %arg9[%c0_16, %c0_17] : memref<1x32xf32, #tpu.memory_space<vmem>>, vector<1x32xf32>
    %c0_18 = arith.constant 0 : index
    %c0_19 = arith.constant 0 : index
    %10 = vector.load %arg10[%c0_18, %c0_19] : memref<32x128xbf16, #tpu.memory_space<vmem>>, vector<32x128xbf16>
    %c0_20 = arith.constant 0 : index
    %c0_21 = arith.constant 0 : index
    %11 = vector.load %arg11[%c0_20, %c0_21] : memref<1x128xf32, #tpu.memory_space<vmem>>, vector<1x128xf32>
    %c0_22 = arith.constant 0 : index
    %c0_23 = arith.constant 0 : index
    %12 = vector.load %arg12[%c0_22, %c0_23] : memref<128x32xbf16, #tpu.memory_space<vmem>>, vector<128x32xbf16>
    %c0_24 = arith.constant 0 : index
    %c0_25 = arith.constant 0 : index
    %13 = vector.load %arg13[%c0_24, %c0_25] : memref<1x32xf32, #tpu.memory_space<vmem>>, vector<1x32xf32>
    %c0_26 = arith.constant 0 : index
    %c0_27 = arith.constant 0 : index
    %14 = vector.load %arg14[%c0_26, %c0_27] : memref<32x128xbf16, #tpu.memory_space<vmem>>, vector<32x128xbf16>
    %c0_28 = arith.constant 0 : index
    %c0_29 = arith.constant 0 : index
    %15 = vector.load %arg15[%c0_28, %c0_29] : memref<1x128xf32, #tpu.memory_space<vmem>>, vector<1x128xf32>
    %cst = arith.constant dense<0.000000e+00> : vector<8x32xf32>
    %16 = tpu.matmul %1, %2, %cst {dimension_numbers = #tpu.dot_dimension_numbers<[1], [0], [0], [1], [0, 0, 1, 1], [], []>} : vector<8x32xbf16>, vector<32x32xbf16>, vector<8x32xf32> -> vector<8x32xf32>
    %17 = vector.broadcast %3 : vector<1x32xf32> to vector<8x32xf32>
    %18 = arith.addf %16, %17 : vector<8x32xf32>
    %cst_30 = arith.constant dense<0.000000e+00> : vector<8xf32>
    %19 = vector.multi_reduction <add>, %18, %cst_30 [1] : vector<8x32xf32> to vector<8xf32>
    %20 = vector.shape_cast %19 : vector<8xf32> to vector<8x1xf32>
    %cst_31 = arith.constant 3.200000e+01 : f32
    %21 = vector.broadcast %cst_31 : f32 to vector<8x1xf32>
    %22 = arith.divf %20, %21 : vector<8x1xf32>
    %23 = vector.broadcast %22 : vector<8x1xf32> to vector<8x32xf32>
    %24 = arith.subf %18, %23 : vector<8x32xf32>
    %25 = arith.mulf %24, %24 : vector<8x32xf32>
    %cst_32 = arith.constant dense<0.000000e+00> : vector<8xf32>
    %26 = vector.multi_reduction <add>, %25, %cst_32 [1] : vector<8x32xf32> to vector<8xf32>
    %27 = vector.shape_cast %26 : vector<8xf32> to vector<8x1xf32>
    %cst_33 = arith.constant 3.200000e+01 : f32
    %28 = vector.broadcast %cst_33 : f32 to vector<8x1xf32>
    %29 = arith.divf %27, %28 : vector<8x1xf32>
    %30 = vector.broadcast %22 : vector<8x1xf32> to vector<8x32xf32>
    %31 = arith.subf %18, %30 : vector<8x32xf32>
    %cst_34 = arith.constant 9.99999974E-6 : f32
    %32 = vector.broadcast %cst_34 : f32 to vector<8x1xf32>
    %33 = arith.addf %29, %32 : vector<8x1xf32>
    %34 = math.rsqrt %33 : vector<8x1xf32>
    %35 = vector.broadcast %34 : vector<8x1xf32> to vector<8x32xf32>
    %36 = arith.mulf %31, %35 : vector<8x32xf32>
    %37 = vector.broadcast %4 : vector<1x32xf32> to vector<8x32xf32>
    %38 = arith.mulf %36, %37 : vector<8x32xf32>
    %39 = vector.broadcast %5 : vector<1x32xf32> to vector<8x32xf32>
    %40 = arith.addf %38, %39 : vector<8x32xf32>
    %41 = arith.truncf %40 : vector<8x32xf32> to vector<8x32xbf16>
    %cst_35 = arith.constant dense<0.000000e+00> : vector<8x96xf32>
    %42 = tpu.matmul %41, %6, %cst_35 {dimension_numbers = #tpu.dot_dimension_numbers<[1], [0], [0], [1], [0, 0, 1, 1], [], []>} : vector<8x32xbf16>, vector<32x96xbf16>, vector<8x96xf32> -> vector<8x96xf32>
    %43 = vector.broadcast %7 : vector<1x96xf32> to vector<8x96xf32>
    %44 = arith.addf %42, %43 : vector<8x96xf32>
    %45 = vector.extract_strided_slice %44 {offsets = [0, 0], sizes = [8, 32], strides = [1, 1]} : vector<8x96xf32> to vector<8x32xf32>
    %46 = vector.shape_cast %45 : vector<8x32xf32> to vector<1x8x32xf32>
    %47 = vector.extract_strided_slice %44 {offsets = [0, 32], sizes = [8, 32], strides = [1, 1]} : vector<8x96xf32> to vector<8x32xf32>
    %48 = vector.shape_cast %47 : vector<8x32xf32> to vector<1x8x32xf32>
    %49 = vector.extract_strided_slice %44 {offsets = [0, 64], sizes = [8, 32], strides = [1, 1]} : vector<8x96xf32> to vector<8x32xf32>
    %50 = vector.shape_cast %49 : vector<8x32xf32> to vector<1x8x32xf32>
    %51 = vector.extract_strided_slice %46 {offsets = [0, 0, 0], sizes = [1, 8, 8], strides = [1, 1, 1]} : vector<1x8x32xf32> to vector<1x8x8xf32>
    %52 = arith.truncf %51 : vector<1x8x8xf32> to vector<1x8x8xbf16>
    %53 = vector.extract_strided_slice %48 {offsets = [0, 0, 0], sizes = [1, 8, 8], strides = [1, 1, 1]} : vector<1x8x32xf32> to vector<1x8x8xf32>
    %54 = arith.truncf %53 : vector<1x8x8xf32> to vector<1x8x8xbf16>
    %55 = vector.extract_strided_slice %50 {offsets = [0, 0, 0], sizes = [1, 8, 8], strides = [1, 1, 1]} : vector<1x8x32xf32> to vector<1x8x8xf32>
    %56 = arith.truncf %55 : vector<1x8x8xf32> to vector<1x8x8xbf16>
    "tpu.trace_start"() <{level = 10 : i32, message = "bld,bmd->blm"}> : () -> ()
    %cst_36 = arith.constant dense<0.000000e+00> : vector<1x8x8xf32>
    %57 = tpu.matmul %52, %54, %cst_36 {dimension_numbers = #tpu.dot_dimension_numbers<[2], [2], [1], [1], [0, 0, 0, 1, 1, 1], [0], [0]>} : vector<1x8x8xbf16>, vector<1x8x8xbf16>, vector<1x8x8xf32> -> vector<1x8x8xf32>
    "tpu.trace_stop"() : () -> ()
    %cst_37 = arith.constant dense<0xFF800000> : vector<1x8xf32>
    %58 = vector.multi_reduction <maximumf>, %57, %cst_37 [2] : vector<1x8x8xf32> to vector<1x8xf32>
    %59 = vector.shape_cast %58 : vector<1x8xf32> to vector<1x8x1xf32>
    %60 = vector.broadcast %59 : vector<1x8x1xf32> to vector<1x8x8xf32>
    %61 = arith.subf %57, %60 : vector<1x8x8xf32>
    %62 = math.exp %61 : vector<1x8x8xf32>
    %cst_38 = arith.constant dense<0.000000e+00> : vector<1x8xf32>
    %63 = vector.multi_reduction <add>, %62, %cst_38 [2] : vector<1x8x8xf32> to vector<1x8xf32>
    %64 = vector.shape_cast %63 : vector<1x8xf32> to vector<1x8x1xf32>
    %65 = tpu.reciprocal %64 {approx = true} : vector<1x8x1xf32> -> vector<1x8x1xf32>
    %66 = vector.broadcast %65 : vector<1x8x1xf32> to vector<1x8x8xf32>
    %67 = arith.mulf %62, %66 : vector<1x8x8xf32>
    %68 = arith.truncf %67 : vector<1x8x8xf32> to vector<1x8x8xbf16>
    "tpu.trace_start"() <{level = 10 : i32, message = "blm,bmd->bld"}> : () -> ()
    %cst_39 = arith.constant dense<0.000000e+00> : vector<1x8x8xf32>
    %69 = tpu.matmul %68, %56, %cst_39 {dimension_numbers = #tpu.dot_dimension_numbers<[2], [1], [1], [2], [0, 0, 0, 1, 1, 2], [0], [0]>} : vector<1x8x8xbf16>, vector<1x8x8xbf16>, vector<1x8x8xf32> -> vector<1x8x8xf32>
    "tpu.trace_stop"() : () -> ()
    %70 = vector.extract_strided_slice %46 {offsets = [0, 0, 8], sizes = [1, 8, 8], strides = [1, 1, 1]} : vector<1x8x32xf32> to vector<1x8x8xf32>
    %71 = arith.truncf %70 : vector<1x8x8xf32> to vector<1x8x8xbf16>
    %72 = vector.extract_strided_slice %48 {offsets = [0, 0, 8], sizes = [1, 8, 8], strides = [1, 1, 1]} : vector<1x8x32xf32> to vector<1x8x8xf32>
    %73 = arith.truncf %72 : vector<1x8x8xf32> to vector<1x8x8xbf16>
    %74 = vector.extract_strided_slice %50 {offsets = [0, 0, 8], sizes = [1, 8, 8], strides = [1, 1, 1]} : vector<1x8x32xf32> to vector<1x8x8xf32>
    %75 = arith.truncf %74 : vector<1x8x8xf32> to vector<1x8x8xbf16>
    "tpu.trace_start"() <{level = 10 : i32, message = "bld,bmd->blm"}> : () -> ()
    %cst_40 = arith.constant dense<0.000000e+00> : vector<1x8x8xf32>
    %76 = tpu.matmul %71, %73, %cst_40 {dimension_numbers = #tpu.dot_dimension_numbers<[2], [2], [1], [1], [0, 0, 0, 1, 1, 1], [0], [0]>} : vector<1x8x8xbf16>, vector<1x8x8xbf16>, vector<1x8x8xf32> -> vector<1x8x8xf32>
    "tpu.trace_stop"() : () -> ()
    %cst_41 = arith.constant dense<0xFF800000> : vector<1x8xf32>
    %77 = vector.multi_reduction <maximumf>, %76, %cst_41 [2] : vector<1x8x8xf32> to vector<1x8xf32>
    %78 = vector.shape_cast %77 : vector<1x8xf32> to vector<1x8x1xf32>
    %79 = vector.broadcast %78 : vector<1x8x1xf32> to vector<1x8x8xf32>
    %80 = arith.subf %76, %79 : vector<1x8x8xf32>
    %81 = math.exp %80 : vector<1x8x8xf32>
    %cst_42 = arith.constant dense<0.000000e+00> : vector<1x8xf32>
    %82 = vector.multi_reduction <add>, %81, %cst_42 [2] : vector<1x8x8xf32> to vector<1x8xf32>
    %83 = vector.shape_cast %82 : vector<1x8xf32> to vector<1x8x1xf32>
    %84 = tpu.reciprocal %83 {approx = true} : vector<1x8x1xf32> -> vector<1x8x1xf32>
    %85 = vector.broadcast %84 : vector<1x8x1xf32> to vector<1x8x8xf32>
    %86 = arith.mulf %81, %85 : vector<1x8x8xf32>
    %87 = arith.truncf %86 : vector<1x8x8xf32> to vector<1x8x8xbf16>
    "tpu.trace_start"() <{level = 10 : i32, message = "blm,bmd->bld"}> : () -> ()
    %cst_43 = arith.constant dense<0.000000e+00> : vector<1x8x8xf32>
    %88 = tpu.matmul %87, %75, %cst_43 {dimension_numbers = #tpu.dot_dimension_numbers<[2], [1], [1], [2], [0, 0, 0, 1, 1, 2], [0], [0]>} : vector<1x8x8xbf16>, vector<1x8x8xbf16>, vector<1x8x8xf32> -> vector<1x8x8xf32>
    "tpu.trace_stop"() : () -> ()
    %89 = vector.extract_strided_slice %46 {offsets = [0, 0, 16], sizes = [1, 8, 8], strides = [1, 1, 1]} : vector<1x8x32xf32> to vector<1x8x8xf32>
    %90 = arith.truncf %89 : vector<1x8x8xf32> to vector<1x8x8xbf16>
    %91 = vector.extract_strided_slice %48 {offsets = [0, 0, 16], sizes = [1, 8, 8], strides = [1, 1, 1]} : vector<1x8x32xf32> to vector<1x8x8xf32>
    %92 = arith.truncf %91 : vector<1x8x8xf32> to vector<1x8x8xbf16>
    %93 = vector.extract_strided_slice %50 {offsets = [0, 0, 16], sizes = [1, 8, 8], strides = [1, 1, 1]} : vector<1x8x32xf32> to vector<1x8x8xf32>
    %94 = arith.truncf %93 : vector<1x8x8xf32> to vector<1x8x8xbf16>
    "tpu.trace_start"() <{level = 10 : i32, message = "bld,bmd->blm"}> : () -> ()
    %cst_44 = arith.constant dense<0.000000e+00> : vector<1x8x8xf32>
    %95 = tpu.matmul %90, %92, %cst_44 {dimension_numbers = #tpu.dot_dimension_numbers<[2], [2], [1], [1], [0, 0, 0, 1, 1, 1], [0], [0]>} : vector<1x8x8xbf16>, vector<1x8x8xbf16>, vector<1x8x8xf32> -> vector<1x8x8xf32>
    "tpu.trace_stop"() : () -> ()
    %cst_45 = arith.constant dense<0xFF800000> : vector<1x8xf32>
    %96 = vector.multi_reduction <maximumf>, %95, %cst_45 [2] : vector<1x8x8xf32> to vector<1x8xf32>
    %97 = vector.shape_cast %96 : vector<1x8xf32> to vector<1x8x1xf32>
    %98 = vector.broadcast %97 : vector<1x8x1xf32> to vector<1x8x8xf32>
    %99 = arith.subf %95, %98 : vector<1x8x8xf32>
    %100 = math.exp %99 : vector<1x8x8xf32>
    %cst_46 = arith.constant dense<0.000000e+00> : vector<1x8xf32>
    %101 = vector.multi_reduction <add>, %100, %cst_46 [2] : vector<1x8x8xf32> to vector<1x8xf32>
    %102 = vector.shape_cast %101 : vector<1x8xf32> to vector<1x8x1xf32>
    %103 = tpu.reciprocal %102 {approx = true} : vector<1x8x1xf32> -> vector<1x8x1xf32>
    %104 = vector.broadcast %103 : vector<1x8x1xf32> to vector<1x8x8xf32>
    %105 = arith.mulf %100, %104 : vector<1x8x8xf32>
    %106 = arith.truncf %105 : vector<1x8x8xf32> to vector<1x8x8xbf16>
    "tpu.trace_start"() <{level = 10 : i32, message = "blm,bmd->bld"}> : () -> ()
    %cst_47 = arith.constant dense<0.000000e+00> : vector<1x8x8xf32>
    %107 = tpu.matmul %106, %94, %cst_47 {dimension_numbers = #tpu.dot_dimension_numbers<[2], [1], [1], [2], [0, 0, 0, 1, 1, 2], [0], [0]>} : vector<1x8x8xbf16>, vector<1x8x8xbf16>, vector<1x8x8xf32> -> vector<1x8x8xf32>
    "tpu.trace_stop"() : () -> ()
    %108 = vector.extract_strided_slice %46 {offsets = [0, 0, 24], sizes = [1, 8, 8], strides = [1, 1, 1]} : vector<1x8x32xf32> to vector<1x8x8xf32>
    %109 = arith.truncf %108 : vector<1x8x8xf32> to vector<1x8x8xbf16>
    %110 = vector.extract_strided_slice %48 {offsets = [0, 0, 24], sizes = [1, 8, 8], strides = [1, 1, 1]} : vector<1x8x32xf32> to vector<1x8x8xf32>
    %111 = arith.truncf %110 : vector<1x8x8xf32> to vector<1x8x8xbf16>
    %112 = vector.extract_strided_slice %50 {offsets = [0, 0, 24], sizes = [1, 8, 8], strides = [1, 1, 1]} : vector<1x8x32xf32> to vector<1x8x8xf32>
    %113 = arith.truncf %112 : vector<1x8x8xf32> to vector<1x8x8xbf16>
    "tpu.trace_start"() <{level = 10 : i32, message = "bld,bmd->blm"}> : () -> ()
    %cst_48 = arith.constant dense<0.000000e+00> : vector<1x8x8xf32>
    %114 = tpu.matmul %109, %111, %cst_48 {dimension_numbers = #tpu.dot_dimension_numbers<[2], [2], [1], [1], [0, 0, 0, 1, 1, 1], [0], [0]>} : vector<1x8x8xbf16>, vector<1x8x8xbf16>, vector<1x8x8xf32> -> vector<1x8x8xf32>
    "tpu.trace_stop"() : () -> ()
    %cst_49 = arith.constant dense<0xFF800000> : vector<1x8xf32>
    %115 = vector.multi_reduction <maximumf>, %114, %cst_49 [2] : vector<1x8x8xf32> to vector<1x8xf32>
    %116 = vector.shape_cast %115 : vector<1x8xf32> to vector<1x8x1xf32>
    %117 = vector.broadcast %116 : vector<1x8x1xf32> to vector<1x8x8xf32>
    %118 = arith.subf %114, %117 : vector<1x8x8xf32>
    %119 = math.exp %118 : vector<1x8x8xf32>
    %cst_50 = arith.constant dense<0.000000e+00> : vector<1x8xf32>
    %120 = vector.multi_reduction <add>, %119, %cst_50 [2] : vector<1x8x8xf32> to vector<1x8xf32>
    %121 = vector.shape_cast %120 : vector<1x8xf32> to vector<1x8x1xf32>
    %122 = tpu.reciprocal %121 {approx = true} : vector<1x8x1xf32> -> vector<1x8x1xf32>
    %123 = vector.broadcast %122 : vector<1x8x1xf32> to vector<1x8x8xf32>
    %124 = arith.mulf %119, %123 : vector<1x8x8xf32>
    %125 = arith.truncf %124 : vector<1x8x8xf32> to vector<1x8x8xbf16>
    "tpu.trace_start"() <{level = 10 : i32, message = "blm,bmd->bld"}> : () -> ()
    %cst_51 = arith.constant dense<0.000000e+00> : vector<1x8x8xf32>
    %126 = tpu.matmul %125, %113, %cst_51 {dimension_numbers = #tpu.dot_dimension_numbers<[2], [1], [1], [2], [0, 0, 0, 1, 1, 2], [0], [0]>} : vector<1x8x8xbf16>, vector<1x8x8xbf16>, vector<1x8x8xf32> -> vector<1x8x8xf32>
    "tpu.trace_stop"() : () -> ()
    %127 = tpu.concatenate %69, %88, %107, %126 in 2 : vector<1x8x8xf32>, vector<1x8x8xf32>, vector<1x8x8xf32>, vector<1x8x8xf32> -> vector<1x8x32xf32>
    %128 = vector.shape_cast %127 : vector<1x8x32xf32> to vector<8x32xf32>
    %129 = arith.truncf %128 : vector<8x32xf32> to vector<8x32xbf16>
    %cst_52 = arith.constant dense<0.000000e+00> : vector<8x32xf32>
    %130 = tpu.matmul %129, %8, %cst_52 {dimension_numbers = #tpu.dot_dimension_numbers<[1], [0], [0], [1], [0, 0, 1, 1], [], []>} : vector<8x32xbf16>, vector<32x32xbf16>, vector<8x32xf32> -> vector<8x32xf32>
    %131 = vector.broadcast %9 : vector<1x32xf32> to vector<8x32xf32>
    %132 = arith.addf %130, %131 : vector<8x32xf32>
    %133 = arith.addf %18, %132 : vector<8x32xf32>
    %cst_53 = arith.constant dense<0.000000e+00> : vector<8xf32>
    %134 = vector.multi_reduction <add>, %133, %cst_53 [1] : vector<8x32xf32> to vector<8xf32>
    %135 = vector.shape_cast %134 : vector<8xf32> to vector<8x1xf32>
    %cst_54 = arith.constant 3.200000e+01 : f32
    %136 = vector.broadcast %cst_54 : f32 to vector<8x1xf32>
    %137 = arith.divf %135, %136 : vector<8x1xf32>
    %138 = vector.broadcast %137 : vector<8x1xf32> to vector<8x32xf32>
    %139 = arith.subf %133, %138 : vector<8x32xf32>
    %140 = arith.mulf %139, %139 : vector<8x32xf32>
    %cst_55 = arith.constant dense<0.000000e+00> : vector<8xf32>
    %141 = vector.multi_reduction <add>, %140, %cst_55 [1] : vector<8x32xf32> to vector<8xf32>
    %142 = vector.shape_cast %141 : vector<8xf32> to vector<8x1xf32>
    %cst_56 = arith.constant 3.200000e+01 : f32
    %143 = vector.broadcast %cst_56 : f32 to vector<8x1xf32>
    %144 = arith.divf %142, %143 : vector<8x1xf32>
    %145 = vector.broadcast %137 : vector<8x1xf32> to vector<8x32xf32>
    %146 = arith.subf %133, %145 : vector<8x32xf32>
    %cst_57 = arith.constant 9.99999974E-6 : f32
    %147 = vector.broadcast %cst_57 : f32 to vector<8x1xf32>
    %148 = arith.addf %144, %147 : vector<8x1xf32>
    %149 = math.rsqrt %148 : vector<8x1xf32>
    %150 = vector.broadcast %149 : vector<8x1xf32> to vector<8x32xf32>
    %151 = arith.mulf %146, %150 : vector<8x32xf32>
    %152 = vector.broadcast %4 : vector<1x32xf32> to vector<8x32xf32>
    %153 = arith.mulf %151, %152 : vector<8x32xf32>
    %154 = vector.broadcast %5 : vector<1x32xf32> to vector<8x32xf32>
    %155 = arith.addf %153, %154 : vector<8x32xf32>
    %156 = arith.truncf %155 : vector<8x32xf32> to vector<8x32xbf16>
    %cst_58 = arith.constant dense<0.000000e+00> : vector<8x128xf32>
    %157 = tpu.matmul %156, %10, %cst_58 {dimension_numbers = #tpu.dot_dimension_numbers<[1], [0], [0], [1], [0, 0, 1, 1], [], []>} : vector<8x32xbf16>, vector<32x128xbf16>, vector<8x128xf32> -> vector<8x128xf32>
    %158 = vector.broadcast %11 : vector<1x128xf32> to vector<8x128xf32>
    %159 = arith.addf %157, %158 : vector<8x128xf32>
    %cst_59 = arith.constant 0.000000e+00 : f32
    %160 = vector.broadcast %cst_59 : f32 to vector<8x128xf32>
    %161 = arith.maximumf %159, %160 : vector<8x128xf32>
    %162 = arith.truncf %161 : vector<8x128xf32> to vector<8x128xbf16>
    %cst_60 = arith.constant dense<0.000000e+00> : vector<8x32xf32>
    %163 = tpu.matmul %162, %12, %cst_60 {dimension_numbers = #tpu.dot_dimension_numbers<[1], [0], [0], [1], [0, 0, 1, 1], [], []>} : vector<8x128xbf16>, vector<128x32xbf16>, vector<8x32xf32> -> vector<8x32xf32>
    %164 = vector.broadcast %13 : vector<1x32xf32> to vector<8x32xf32>
    %165 = arith.addf %163, %164 : vector<8x32xf32>
    %cst_61 = arith.constant 0.000000e+00 : f32
    %166 = vector.broadcast %cst_61 : f32 to vector<8x32xf32>
    %167 = arith.maximumf %165, %166 : vector<8x32xf32>
    %168 = arith.addf %133, %167 : vector<8x32xf32>
    %169 = arith.truncf %168 : vector<8x32xf32> to vector<8x32xbf16>
    %cst_62 = arith.constant dense<0.000000e+00> : vector<8x128xf32>
    %170 = tpu.matmul %169, %14, %cst_62 {dimension_numbers = #tpu.dot_dimension_numbers<[1], [0], [0], [1], [0, 0, 1, 1], [], []>} : vector<8x32xbf16>, vector<32x128xbf16>, vector<8x128xf32> -> vector<8x128xf32>
    %171 = vector.broadcast %15 : vector<1x128xf32> to vector<8x128xf32>
    %172 = arith.addf %170, %171 : vector<8x128xf32>
    %173 = vector.shape_cast %172 : vector<8x128xf32> to vector<1x8x128xf32>
    %174 = arith.truncf %173 : vector<1x8x128xf32> to vector<1x8x128xbf16>
    %c0_63 = arith.constant 0 : index
    %c0_64 = arith.constant 0 : index
    %c0_65 = arith.constant 0 : index
    %175 = vector.load %arg16[%c0_63, %c0_64, %c0_65] : memref<1x8x128xbf16, #tpu.memory_space<vmem>>, vector<1x8x128xbf16>
    tpu.vector_store %arg16[%c0_63, %c0_64, %c0_65], %174 {strides = array<i32>} : memref<1x8x128xbf16, #tpu.memory_space<vmem>>, vector<1x8x128xbf16>,
    return
  }
  func.func @transform_0(%arg0: i32) -> (i32, i32, i32) {
    %c0_i32 = arith.constant 0 : i32
    %c0_i32_0 = arith.constant 0 : i32
    %c0_i32_1 = arith.constant 0 : i32
    return %arg0, %c0_i32, %c0_i32_0 : i32, i32, i32
  }
  func.func @transform_1(%arg0: i32) -> (i32, i32) {
    %c0_i32 = arith.constant 0 : i32
    %c0_i32_0 = arith.constant 0 : i32
    %c0_i32_1 = arith.constant 0 : i32
    return %c0_i32, %c0_i32_0 : i32, i32
  }
  func.func @transform_2(%arg0: i32) -> (i32, i32) {
    %c0_i32 = arith.constant 0 : i32
    %c0_i32_0 = arith.constant 0 : i32
    %c0_i32_1 = arith.constant 0 : i32
    return %c0_i32, %c0_i32_0 : i32, i32
  }
  func.func @transform_3(%arg0: i32) -> (i32, i32) {
    %c0_i32 = arith.constant 0 : i32
    %c0_i32_0 = arith.constant 0 : i32
    %c0_i32_1 = arith.constant 0 : i32
    return %c0_i32, %c0_i32_0 : i32, i32
  }
  func.func @transform_4(%arg0: i32) -> (i32, i32) {
    %c0_i32 = arith.constant 0 : i32
    %c0_i32_0 = arith.constant 0 : i32
    %c0_i32_1 = arith.constant 0 : i32
    return %c0_i32, %c0_i32_0 : i32, i32
  }
  func.func @transform_5(%arg0: i32) -> (i32, i32) {
    %c0_i32 = arith.constant 0 : i32
    %c0_i32_0 = arith.constant 0 : i32
    %c0_i32_1 = arith.constant 0 : i32
    return %c0_i32, %c0_i32_0 : i32, i32
  }
  func.func @transform_6(%arg0: i32) -> (i32, i32) {
    %c0_i32 = arith.constant 0 : i32
    %c0_i32_0 = arith.constant 0 : i32
    %c0_i32_1 = arith.constant 0 : i32
    return %c0_i32, %c0_i32_0 : i32, i32
  }
  func.func @transform_7(%arg0: i32) -> (i32, i32) {
    %c0_i32 = arith.constant 0 : i32
    %c0_i32_0 = arith.constant 0 : i32
    %c0_i32_1 = arith.constant 0 : i32
    return %c0_i32, %c0_i32_0 : i32, i32
  }
  func.func @transform_8(%arg0: i32) -> (i32, i32) {
    %c0_i32 = arith.constant 0 : i32
    %c0_i32_0 = arith.constant 0 : i32
    %c0_i32_1 = arith.constant 0 : i32
    return %c0_i32, %c0_i32_0 : i32, i32
  }
  func.func @transform_9(%arg0: i32) -> (i32, i32) {
    %c0_i32 = arith.constant 0 : i32
    %c0_i32_0 = arith.constant 0 : i32
    %c0_i32_1 = arith.constant 0 : i32
    return %c0_i32, %c0_i32_0 : i32, i32
  }
  func.func @transform_10(%arg0: i32) -> (i32, i32) {
    %c0_i32 = arith.constant 0 : i32
    %c0_i32_0 = arith.constant 0 : i32
    %c0_i32_1 = arith.constant 0 : i32
    return %c0_i32, %c0_i32_0 : i32, i32
  }
  func.func @transform_11(%arg0: i32) -> (i32, i32) {
    %c0_i32 = arith.constant 0 : i32
    %c0_i32_0 = arith.constant 0 : i32
    %c0_i32_1 = arith.constant 0 : i32
    return %c0_i32, %c0_i32_0 : i32, i32
  }
  func.func @transform_12(%arg0: i32) -> (i32, i32) {
    %c0_i32 = arith.constant 0 : i32
    %c0_i32_0 = arith.constant 0 : i32
    %c0_i32_1 = arith.constant 0 : i32
    return %c0_i32, %c0_i32_0 : i32, i32
  }
  func.func @transform_13(%arg0: i32) -> (i32, i32) {
    %c0_i32 = arith.constant 0 : i32
    %c0_i32_0 = arith.constant 0 : i32
    %c0_i32_1 = arith.constant 0 : i32
    return %c0_i32, %c0_i32_0 : i32, i32
  }
  func.func @transform_14(%arg0: i32) -> (i32, i32) {
    %c0_i32 = arith.constant 0 : i32
    %c0_i32_0 = arith.constant 0 : i32
    %c0_i32_1 = arith.constant 0 : i32
    return %c0_i32, %c0_i32_0 : i32, i32
  }
  func.func @transform_15(%arg0: i32) -> (i32, i32, i32) {
    %c0_i32 = arith.constant 0 : i32
    %c0_i32_0 = arith.constant 0 : i32
    %c0_i32_1 = arith.constant 0 : i32
    return %arg0, %c0_i32, %c0_i32_0 : i32, i32, i32
  }
}

module attributes {stable_mosaic.version = 11 : i64} {
  func.func @_vit_kernel(%arg0: i32, %arg1: memref<1x8x32xbf16, #tpu.memory_space<vmem>>, %arg2: memref<32x32xbf16, #tpu.memory_space<vmem>>, %arg3: memref<1x32xf32, #tpu.memory_space<vmem>>, %arg4: memref<1x32xf32, #tpu.memory_space<vmem>>, %arg5: memref<1x32xf32, #tpu.memory_space<vmem>>, %arg6: memref<32x96xbf16, #tpu.memory_space<vmem>>, %arg7: memref<1x96xf32, #tpu.memory_space<vmem>>, %arg8: memref<32x32xbf16, #tpu.memory_space<vmem>>, %arg9: memref<1x32xf32, #tpu.memory_space<vmem>>, %arg10: memref<32x128xbf16, #tpu.memory_space<vmem>>, %arg11: memref<1x128xf32, #tpu.memory_space<vmem>>, %arg12: memref<128x32xbf16, #tpu.memory_space<vmem>>, %arg13: memref<1x32xf32, #tpu.memory_space<vmem>>, %arg14: memref<32x128xbf16, #tpu.memory_space<vmem>>, %arg15: memref<1x128xf32, #tpu.memory_space<vmem>>, %arg16: memref<1x8x128xbf16, #tpu.memory_space<vmem>>) attributes {dimension_semantics = [#tpu.dimension_semantics<parallel>], iteration_bounds = array<i64: 2>, scalar_prefetch = 0 : i64, scratch_operands = 0 : i64, tpu.core_type = #tpu.core_type<tc>, window_params = [{transform_indices = @transform_0, window_bounds = array<i64: 1, 8, 32>}, {pipeline_mode = #tpu.pipeline_mode<synchronous>, transform_indices = @transform_1, window_bounds = array<i64: 32, 32>}, {pipeline_mode = #tpu.pipeline_mode<synchronous>, transform_indices = @transform_2, window_bounds = array<i64: 1, 32>}, {pipeline_mode = #tpu.pipeline_mode<synchronous>, transform_indices = @transform_3, window_bounds = array<i64: 1, 32>}, {pipeline_mode = #tpu.pipeline_mode<synchronous>, transform_indices = @transform_4, window_bounds = array<i64: 1, 32>}, {pipeline_mode = #tpu.pipeline_mode<synchronous>, transform_indices = @transform_5, window_bounds = array<i64: 32, 96>}, {pipeline_mode = #tpu.pipeline_mode<synchronous>, transform_indices = @transform_6, window_bounds = array<i64: 1, 96>}, {pipeline_mode = #tpu.pipeline_mode<synchronous>, transform_indices = @transform_7, window_bounds = array<i64: 32, 32>}, {pipeline_mode = #tpu.pipeline_mode<synchronous>, transform_indices = @transform_8, window_bounds = array<i64: 1, 32>}, {pipeline_mode = #tpu.pipeline_mode<synchronous>, transform_indices = @transform_9, window_bounds = array<i64: 32, 128>}, {pipeline_mode = #tpu.pipeline_mode<synchronous>, transform_indices = @transform_10, window_bounds = array<i64: 1, 128>}, {pipeline_mode = #tpu.pipeline_mode<synchronous>, transform_indices = @transform_11, window_bounds = array<i64: 128, 32>}, {pipeline_mode = #tpu.pipeline_mode<synchronous>, transform_indices = @transform_12, window_bounds = array<i64: 1, 32>}, {pipeline_mode = #tpu.pipeline_mode<synchronous>, transform_indices = @transform_13, window_bounds = array<i64: 32, 128>}, {pipeline_mode = #tpu.pipeline_mode<synchronous>, transform_indices = @transform_14, window_bounds = array<i64: 1, 128>}, {transform_indices = @transform_15, window_bounds = array<i64: 1, 8, 128>}]} {
    %c0 = arith.constant 0 : index
    %c0_0 = arith.constant 0 : index
    %c0_1 = arith.constant 0 : index
    %0 = vector.load %arg1[%c0, %c0_0, %c0_1] : memref<1x8x32xbf16, #tpu.memory_space<vmem>>, vector<1x8x32xbf16>
    %1 = vector.shape_cast %0 : vector<1x8x32xbf16> to vector<8x32xbf16>
    %c0_2 = arith.constant 0 : index
    %c0_3 = arith.constant 0 : index
    %2 = vector.load %arg2[%c0_2, %c0_3] : memref<32x32xbf16, #tpu.memory_space<vmem>>, vector<32x32xbf16>
    %c0_4 = arith.constant 0 : index
    %c0_5 = arith.constant 0 : index
    %3 = vector.load %arg3[%c0_4, %c0_5] : memref<1x32xf32, #tpu.memory_space<vmem>>, vector<1x32xf32>
    %c0_6 = arith.constant 0 : index
    %c0_7 = arith.constant 0 : index
    %4 = vector.load %arg4[%c0_6, %c0_7] : memref<1x32xf32, #tpu.memory_space<vmem>>, vector<1x32xf32>
    %c0_8 = arith.constant 0 : index
    %c0_9 = arith.constant 0 : index
    %5 = vector.load %arg5[%c0_8, %c0_9] : memref<1x32xf32, #tpu.memory_space<vmem>>, vector<1x32xf32>
    %c0_10 = arith.constant 0 : index
    %c0_11 = arith.constant 0 : index
    %6 = vector.load %arg6[%c0_10, %c0_11] : memref<32x96xbf16, #tpu.memory_space<vmem>>, vector<32x96xbf16>
    %c0_12 = arith.constant 0 : index
    %c0_13 = arith.constant 0 : index
    %7 = vector.load %arg7[%c0_12, %c0_13] : memref<1x96xf32, #tpu.memory_space<vmem>>, vector<1x96xf32>
    %c0_14 = arith.constant 0 : index
    %c0_15 = arith.constant 0 : index
    %8 = vector.load %arg8[%c0_14, %c0_15] : memref<32x32xbf16, #tpu.memory_space<vmem>>, vector<32x32xbf16>
    %c0_16 = arith.constant 0 : index
    %c0_17 = arith.constant 0 : index
    %9 = vector.load %arg9[%c0_16, %c0_17] : memref<1x32xf32, #tpu.memory_space<vmem>>, vector<1x32xf32>
    %c0_18 = arith.constant 0 : index
    %c0_19 = arith.constant 0 : index
    %10 = vector.load %arg10[%c0_18, %c0_19] : memref<32x128xbf16, #tpu.memory_space<vmem>>, vector<32x128xbf16>
    %c0_20 = arith.constant 0 : index
    %c0_21 = arith.constant 0 : index
    %11 = vector.load %arg11[%c0_20, %c0_21] : memref<1x128xf32, #tpu.memory_space<vmem>>, vector<1x128xf32>
    %c0_22 = arith.constant 0 : index
    %c0_23 = arith.constant 0 : index
    %12 = vector.load %arg12[%c0_22, %c0_23] : memref<128x32xbf16, #tpu.memory_space<vmem>>, vector<128x32xbf16>
    %c0_24 = arith.constant 0 : index
    %c0_25 = arith.constant 0 : index
    %13 = vector.load %arg13[%c0_24, %c0_25] : memref<1x32xf32, #tpu.memory_space<vmem>>, vector<1x32xf32>
    %c0_26 = arith.constant 0 : index
    %c0_27 = arith.constant 0 : index
    %14 = vector.load %arg14[%c0_26, %c0_27] : memref<32x128xbf16, #tpu.memory_space<vmem>>, vector<32x128xbf16>
    %c0_28 = arith.constant 0 : index
    %c0_29 = arith.constant 0 : index
    %15 = vector.load %arg15[%c0_28, %c0_29] : memref<1x128xf32, #tpu.memory_space<vmem>>, vector<1x128xf32>
    %cst = arith.constant dense<0.000000e+00> : vector<8x32xf32>
    %16 = tpu.matmul %1, %2, %cst {dimension_numbers = #tpu.dot_dimension_numbers<[1], [0], [0], [1], [0, 0, 1, 1], [], []>} : vector<8x32xbf16>, vector<32x32xbf16>, vector<8x32xf32> -> vector<8x32xf32>
    %17 = vector.broadcast %3 : vector<1x32xf32> to vector<8x32xf32>
    %18 = arith.addf %16, %17 : vector<8x32xf32>
    %cst_30 = arith.constant dense<0.000000e+00> : vector<8xf32>
    %19 = vector.multi_reduction <add>, %18, %cst_30 [1] : vector<8x32xf32> to vector<8xf32>
    %20 = vector.shape_cast %19 : vector<8xf32> to vector<8x1xf32>
    %cst_31 = arith.constant 3.200000e+01 : f32
    %21 = vector.broadcast %cst_31 : f32 to vector<8x1xf32>
    %22 = arith.divf %20, %21 : vector<8x1xf32>
    %23 = vector.broadcast %22 : vector<8x1xf32> to vector<8x32xf32>
    %24 = arith.subf %18, %23 : vector<8x32xf32>
    %25 = arith.mulf %24, %24 : vector<8x32xf32>
    %cst_32 = arith.constant dense<0.000000e+00> : vector<8xf32>
    %26 = vector.multi_reduction <add>, %25, %cst_32 [1] : vector<8x32xf32> to vector<8xf32>
    %27 = vector.shape_cast %26 : vector<8xf32> to vector<8x1xf32>
    %cst_33 = arith.constant 3.200000e+01 : f32
    %28 = vector.broadcast %cst_33 : f32 to vector<8x1xf32>
    %29 = arith.divf %27, %28 : vector<8x1xf32>
    %30 = vector.broadcast %22 : vector<8x1xf32> to vector<8x32xf32>
    %31 = arith.subf %18, %30 : vector<8x32xf32>
    %cst_34 = arith.constant 9.99999974E-6 : f32
    %32 = vector.broadcast %cst_34 : f32 to vector<8x1xf32>
    %33 = arith.addf %29, %32 : vector<8x1xf32>
    %34 = math.rsqrt %33 : vector<8x1xf32>
    %35 = vector.broadcast %34 : vector<8x1xf32> to vector<8x32xf32>
    %36 = arith.mulf %31, %35 : vector<8x32xf32>
    %37 = vector.broadcast %4 : vector<1x32xf32> to vector<8x32xf32>
    %38 = arith.mulf %36, %37 : vector<8x32xf32>
    %39 = vector.broadcast %5 : vector<1x32xf32> to vector<8x32xf32>
    %40 = arith.addf %38, %39 : vector<8x32xf32>
    %41 = arith.truncf %40 : vector<8x32xf32> to vector<8x32xbf16>
    %cst_35 = arith.constant dense<0.000000e+00> : vector<8x96xf32>
    %42 = tpu.matmul %41, %6, %cst_35 {dimension_numbers = #tpu.dot_dimension_numbers<[1], [0], [0], [1], [0, 0, 1, 1], [], []>} : vector<8x32xbf16>, vector<32x96xbf16>, vector<8x96xf32> -> vector<8x96xf32>
    %43 = vector.broadcast %7 : vector<1x96xf32> to vector<8x96xf32>
    %44 = arith.addf %42, %43 : vector<8x96xf32>
    %45 = vector.extract_strided_slice %44 {offsets = [0, 0], sizes = [8, 32], strides = [1, 1]} : vector<8x96xf32> to vector<8x32xf32>
    %46 = vector.shape_cast %45 : vector<8x32xf32> to vector<1x8x32xf32>
    %47 = vector.extract_strided_slice %44 {offsets = [0, 32], sizes = [8, 32], strides = [1, 1]} : vector<8x96xf32> to vector<8x32xf32>
    %48 = vector.shape_cast %47 : vector<8x32xf32> to vector<1x8x32xf32>
    %49 = vector.extract_strided_slice %44 {offsets = [0, 64], sizes = [8, 32], strides = [1, 1]} : vector<8x96xf32> to vector<8x32xf32>
    %50 = vector.shape_cast %49 : vector<8x32xf32> to vector<1x8x32xf32>
    %51 = vector.extract_strided_slice %46 {offsets = [0, 0, 0], sizes = [1, 8, 8], strides = [1, 1, 1]} : vector<1x8x32xf32> to vector<1x8x8xf32>
    %52 = arith.truncf %51 : vector<1x8x8xf32> to vector<1x8x8xbf16>
    %53 = vector.extract_strided_slice %48 {offsets = [0, 0, 0], sizes = [1, 8, 8], strides = [1, 1, 1]} : vector<1x8x32xf32> to vector<1x8x8xf32>
    %54 = arith.truncf %53 : vector<1x8x8xf32> to vector<1x8x8xbf16>
    %55 = vector.extract_strided_slice %50 {offsets = [0, 0, 0], sizes = [1, 8, 8], strides = [1, 1, 1]} : vector<1x8x32xf32> to vector<1x8x8xf32>
    %56 = arith.truncf %55 : vector<1x8x8xf32> to vector<1x8x8xbf16>
    "tpu.trace_start"() <{level = 10 : i32, message = "bld,bmd->blm"}> : () -> ()
    %cst_36 = arith.constant dense<0.000000e+00> : vector<1x8x8xf32>
    %57 = tpu.matmul %52, %54, %cst_36 {dimension_numbers = #tpu.dot_dimension_numbers<[2], [2], [1], [1], [0, 0, 0, 1, 1, 1], [0], [0]>} : vector<1x8x8xbf16>, vector<1x8x8xbf16>, vector<1x8x8xf32> -> vector<1x8x8xf32>
    "tpu.trace_stop"() : () -> ()
    %cst_37 = arith.constant dense<0xFF800000> : vector<1x8xf32>
    %58 = vector.multi_reduction <maximumf>, %57, %cst_37 [2] : vector<1x8x8xf32> to vector<1x8xf32>
    %59 = vector.shape_cast %58 : vector<1x8xf32> to vector<1x8x1xf32>
    %60 = vector.broadcast %59 : vector<1x8x1xf32> to vector<1x8x8xf32>
    %61 = arith.subf %57, %60 : vector<1x8x8xf32>
    %62 = math.exp %61 : vector<1x8x8xf32>
    %cst_38 = arith.constant dense<0.000000e+00> : vector<1x8xf32>
    %63 = vector.multi_reduction <add>, %62, %cst_38 [2] : vector<1x8x8xf32> to vector<1x8xf32>
    %64 = vector.shape_cast %63 : vector<1x8xf32> to vector<1x8x1xf32>
    %65 = tpu.reciprocal %64 {approx = true} : vector<1x8x1xf32> -> vector<1x8x1xf32>
    %66 = vector.broadcast %65 : vector<1x8x1xf32> to vector<1x8x8xf32>
    %67 = arith.mulf %62, %66 : vector<1x8x8xf32>
    %68 = arith.truncf %67 : vector<1x8x8xf32> to vector<1x8x8xbf16>
    "tpu.trace_start"() <{level = 10 : i32, message = "blm,bmd->bld"}> : () -> ()
    %cst_39 = arith.constant dense<0.000000e+00> : vector<1x8x8xf32>
    %69 = tpu.matmul %68, %56, %cst_39 {dimension_numbers = #tpu.dot_dimension_numbers<[2], [1], [1], [2], [0, 0, 0, 1, 1, 2], [0], [0]>} : vector<1x8x8xbf16>, vector<1x8x8xbf16>, vector<1x8x8xf32> -> vector<1x8x8xf32>
    "tpu.trace_stop"() : () -> ()
    %70 = vector.extract_strided_slice %46 {offsets = [0, 0, 8], sizes = [1, 8, 8], strides = [1, 1, 1]} : vector<1x8x32xf32> to vector<1x8x8xf32>
    %71 = arith.truncf %70 : vector<1x8x8xf32> to vector<1x8x8xbf16>
    %72 = vector.extract_strided_slice %48 {offsets = [0, 0, 8], sizes = [1, 8, 8], strides = [1, 1, 1]} : vector<1x8x32xf32> to vector<1x8x8xf32>
    %73 = arith.truncf %72 : vector<1x8x8xf32> to vector<1x8x8xbf16>
    %74 = vector.extract_strided_slice %50 {offsets = [0, 0, 8], sizes = [1, 8, 8], strides = [1, 1, 1]} : vector<1x8x32xf32> to vector<1x8x8xf32>
    %75 = arith.truncf %74 : vector<1x8x8xf32> to vector<1x8x8xbf16>
    "tpu.trace_start"() <{level = 10 : i32, message = "bld,bmd->blm"}> : () -> ()
    %cst_40 = arith.constant dense<0.000000e+00> : vector<1x8x8xf32>
    %76 = tpu.matmul %71, %73, %cst_40 {dimension_numbers = #tpu.dot_dimension_numbers<[2], [2], [1], [1], [0, 0, 0, 1, 1, 1], [0], [0]>} : vector<1x8x8xbf16>, vector<1x8x8xbf16>, vector<1x8x8xf32> -> vector<1x8x8xf32>
    "tpu.trace_stop"() : () -> ()
    %cst_41 = arith.constant dense<0xFF800000> : vector<1x8xf32>
    %77 = vector.multi_reduction <maximumf>, %76, %cst_41 [2] : vector<1x8x8xf32> to vector<1x8xf32>
    %78 = vector.shape_cast %77 : vector<1x8xf32> to vector<1x8x1xf32>
    %79 = vector.broadcast %78 : vector<1x8x1xf32> to vector<1x8x8xf32>
    %80 = arith.subf %76, %79 : vector<1x8x8xf32>
    %81 = math.exp %80 : vector<1x8x8xf32>
    %cst_42 = arith.constant dense<0.000000e+00> : vector<1x8xf32>
    %82 = vector.multi_reduction <add>, %81, %cst_42 [2] : vector<1x8x8xf32> to vector<1x8xf32>
    %83 = vector.shape_cast %82 : vector<1x8xf32> to vector<1x8x1xf32>
    %84 = tpu.reciprocal %83 {approx = true} : vector<1x8x1xf32> -> vector<1x8x1xf32>
    %85 = vector.broadcast %84 : vector<1x8x1xf32> to vector<1x8x8xf32>
    %86 = arith.mulf %81, %85 : vector<1x8x8xf32>
    %87 = arith.truncf %86 : vector<1x8x8xf32> to vector<1x8x8xbf16>
    "tpu.trace_start"() <{level = 10 : i32, message = "blm,bmd->bld"}> : () -> ()
    %cst_43 = arith.constant dense<0.000000e+00> : vector<1x8x8xf32>
    %88 = tpu.matmul %87, %75, %cst_43 {dimension_numbers = #tpu.dot_dimension_numbers<[2], [1], [1], [2], [0, 0, 0, 1, 1, 2], [0], [0]>} : vector<1x8x8xbf16>, vector<1x8x8xbf16>, vector<1x8x8xf32> -> vector<1x8x8xf32>
    "tpu.trace_stop"() : () -> ()
    %89 = vector.extract_strided_slice %46 {offsets = [0, 0, 16], sizes = [1, 8, 8], strides = [1, 1, 1]} : vector<1x8x32xf32> to vector<1x8x8xf32>
    %90 = arith.truncf %89 : vector<1x8x8xf32> to vector<1x8x8xbf16>
    %91 = vector.extract_strided_slice %48 {offsets = [0, 0, 16], sizes = [1, 8, 8], strides = [1, 1, 1]} : vector<1x8x32xf32> to vector<1x8x8xf32>
    %92 = arith.truncf %91 : vector<1x8x8xf32> to vector<1x8x8xbf16>
    %93 = vector.extract_strided_slice %50 {offsets = [0, 0, 16], sizes = [1, 8, 8], strides = [1, 1, 1]} : vector<1x8x32xf32> to vector<1x8x8xf32>
    %94 = arith.truncf %93 : vector<1x8x8xf32> to vector<1x8x8xbf16>
    "tpu.trace_start"() <{level = 10 : i32, message = "bld,bmd->blm"}> : () -> ()
    %cst_44 = arith.constant dense<0.000000e+00> : vector<1x8x8xf32>
    %95 = tpu.matmul %90, %92, %cst_44 {dimension_numbers = #tpu.dot_dimension_numbers<[2], [2], [1], [1], [0, 0, 0, 1, 1, 1], [0], [0]>} : vector<1x8x8xbf16>, vector<1x8x8xbf16>, vector<1x8x8xf32> -> vector<1x8x8xf32>
    "tpu.trace_stop"() : () -> ()
    %cst_45 = arith.constant dense<0xFF800000> : vector<1x8xf32>
    %96 = vector.multi_reduction <maximumf>, %95, %cst_45 [2] : vector<1x8x8xf32> to vector<1x8xf32>
    %97 = vector.shape_cast %96 : vector<1x8xf32> to vector<1x8x1xf32>
    %98 = vector.broadcast %97 : vector<1x8x1xf32> to vector<1x8x8xf32>
    %99 = arith.subf %95, %98 : vector<1x8x8xf32>
    %100 = math.exp %99 : vector<1x8x8xf32>
    %cst_46 = arith.constant dense<0.000000e+00> : vector<1x8xf32>
    %101 = vector.multi_reduction <add>, %100, %cst_46 [2] : vector<1x8x8xf32> to vector<1x8xf32>
    %102 = vector.shape_cast %101 : vector<1x8xf32> to vector<1x8x1xf32>
    %103 = tpu.reciprocal %102 {approx = true} : vector<1x8x1xf32> -> vector<1x8x1xf32>
    %104 = vector.broadcast %103 : vector<1x8x1xf32> to vector<1x8x8xf32>
    %105 = arith.mulf %100, %104 : vector<1x8x8xf32>
    %106 = arith.truncf %105 : vector<1x8x8xf32> to vector<1x8x8xbf16>
    "tpu.trace_start"() <{level = 10 : i32, message = "blm,bmd->bld"}> : () -> ()
    %cst_47 = arith.constant dense<0.000000e+00> : vector<1x8x8xf32>
    %107 = tpu.matmul %106, %94, %cst_47 {dimension_numbers = #tpu.dot_dimension_numbers<[2], [1], [1], [2], [0, 0, 0, 1, 1, 2], [0], [0]>} : vector<1x8x8xbf16>, vector<1x8x8xbf16>, vector<1x8x8xf32> -> vector<1x8x8xf32>
    "tpu.trace_stop"() : () -> ()
    %108 = vector.extract_strided_slice %46 {offsets = [0, 0, 24], sizes = [1, 8, 8], strides = [1, 1, 1]} : vector<1x8x32xf32> to vector<1x8x8xf32>
    %109 = arith.truncf %108 : vector<1x8x8xf32> to vector<1x8x8xbf16>
    %110 = vector.extract_strided_slice %48 {offsets = [0, 0, 24], sizes = [1, 8, 8], strides = [1, 1, 1]} : vector<1x8x32xf32> to vector<1x8x8xf32>
    %111 = arith.truncf %110 : vector<1x8x8xf32> to vector<1x8x8xbf16>
    %112 = vector.extract_strided_slice %50 {offsets = [0, 0, 24], sizes = [1, 8, 8], strides = [1, 1, 1]} : vector<1x8x32xf32> to vector<1x8x8xf32>
    %113 = arith.truncf %112 : vector<1x8x8xf32> to vector<1x8x8xbf16>
    "tpu.trace_start"() <{level = 10 : i32, message = "bld,bmd->blm"}> : () -> ()
    %cst_48 = arith.constant dense<0.000000e+00> : vector<1x8x8xf32>
    %114 = tpu.matmul %109, %111, %cst_48 {dimension_numbers = #tpu.dot_dimension_numbers<[2], [2], [1], [1], [0, 0, 0, 1, 1, 1], [0], [0]>} : vector<1x8x8xbf16>, vector<1x8x8xbf16>, vector<1x8x8xf32> -> vector<1x8x8xf32>
    "tpu.trace_stop"() : () -> ()
    %cst_49 = arith.constant dense<0xFF800000> : vector<1x8xf32>
    %115 = vector.multi_reduction <maximumf>, %114, %cst_49 [2] : vector<1x8x8xf32> to vector<1x8xf32>
    %116 = vector.shape_cast %115 : vector<1x8xf32> to vector<1x8x1xf32>
    %117 = vector.broadcast %116 : vector<1x8x1xf32> to vector<1x8x8xf32>
    %118 = arith.subf %114, %117 : vector<1x8x8xf32>
    %119 = math.exp %118 : vector<1x8x8xf32>
    %cst_50 = arith.constant dense<0.000000e+00> : vector<1x8xf32>
    %120 = vector.multi_reduction <add>, %119, %cst_50 [2] : vector<1x8x8xf32> to vector<1x8xf32>
    %121 = vector.shape_cast %120 : vector<1x8xf32> to vector<1x8x1xf32>
    %122 = tpu.reciprocal %121 {approx = true} : vector<1x8x1xf32> -> vector<1x8x1xf32>
    %123 = vector.broadcast %122 : vector<1x8x1xf32> to vector<1x8x8xf32>
    %124 = arith.mulf %119, %123 : vector<1x8x8xf32>
    %125 = arith.truncf %124 : vector<1x8x8xf32> to vector<1x8x8xbf16>
    "tpu.trace_start"() <{level = 10 : i32, message = "blm,bmd->bld"}> : () -> ()
    %cst_51 = arith.constant dense<0.000000e+00> : vector<1x8x8xf32>
    %126 = tpu.matmul %125, %113, %cst_51 {dimension_numbers = #tpu.dot_dimension_numbers<[2], [1], [1], [2], [0, 0, 0, 1, 1, 2], [0], [0]>} : vector<1x8x8xbf16>, vector<1x8x8xbf16>, vector<1x8x8xf32> -> vector<1x8x8xf32>
    "tpu.trace_stop"() : () -> ()
    %127 = tpu.concatenate %69, %88, %107, %126 in 2 : vector<1x8x8xf32>, vector<1x8x8xf32>, vector<1x8x8xf32>, vector<1x8x8xf32> -> vector<1x8x32xf32>
    %128 = vector.shape_cast %127 : vector<1x8x32xf32> to vector<8x32xf32>
    %129 = arith.truncf %128 : vector<8x32xf32> to vector<8x32xbf16>
    %cst_52 = arith.constant dense<0.000000e+00> : vector<8x32xf32>
    %130 = tpu.matmul %129, %8, %cst_52 {dimension_numbers = #tpu.dot_dimension_numbers<[1], [0], [0], [1], [0, 0, 1, 1], [], []>} : vector<8x32xbf16>, vector<32x32xbf16>, vector<8x32xf32> -> vector<8x32xf32>
    %131 = vector.broadcast %9 : vector<1x32xf32> to vector<8x32xf32>
    %132 = arith.addf %130, %131 : vector<8x32xf32>
    %133 = arith.addf %18, %132 : vector<8x32xf32>
    %cst_53 = arith.constant dense<0.000000e+00> : vector<8xf32>
    %134 = vector.multi_reduction <add>, %133, %cst_53 [1] : vector<8x32xf32> to vector<8xf32>
    %135 = vector.shape_cast %134 : vector<8xf32> to vector<8x1xf32>
    %cst_54 = arith.constant 3.200000e+01 : f32
    %136 = vector.broadcast %cst_54 : f32 to vector<8x1xf32>
    %137 = arith.divf %135, %136 : vector<8x1xf32>
    %138 = vector.broadcast %137 : vector<8x1xf32> to vector<8x32xf32>
    %139 = arith.subf %133, %138 : vector<8x32xf32>
    %140 = arith.mulf %139, %139 : vector<8x32xf32>
    %cst_55 = arith.constant dense<0.000000e+00> : vector<8xf32>
    %141 = vector.multi_reduction <add>, %140, %cst_55 [1] : vector<8x32xf32> to vector<8xf32>
    %142 = vector.shape_cast %141 : vector<8xf32> to vector<8x1xf32>
    %cst_56 = arith.constant 3.200000e+01 : f32
    %143 = vector.broadcast %cst_56 : f32 to vector<8x1xf32>
    %144 = arith.divf %142, %143 : vector<8x1xf32>
    %145 = vector.broadcast %137 : vector<8x1xf32> to vector<8x32xf32>
    %146 = arith.subf %133, %145 : vector<8x32xf32>
    %cst_57 = arith.constant 9.99999974E-6 : f32
    %147 = vector.broadcast %cst_57 : f32 to vector<8x1xf32>
    %148 = arith.addf %144, %147 : vector<8x1xf32>
    %149 = math.rsqrt %148 : vector<8x1xf32>
    %150 = vector.broadcast %149 : vector<8x1xf32> to vector<8x32xf32>
    %151 = arith.mulf %146, %150 : vector<8x32xf32>
    %152 = vector.broadcast %4 : vector<1x32xf32> to vector<8x32xf32>
    %153 = arith.mulf %151, %152 : vector<8x32xf32>
    %154 = vector.broadcast %5 : vector<1x32xf32> to vector<8x32xf32>
    %155 = arith.addf %153, %154 : vector<8x32xf32>
    %156 = arith.truncf %155 : vector<8x32xf32> to vector<8x32xbf16>
    %cst_58 = arith.constant dense<0.000000e+00> : vector<8x128xf32>
    %157 = tpu.matmul %156, %10, %cst_58 {dimension_numbers = #tpu.dot_dimension_numbers<[1], [0], [0], [1], [0, 0, 1, 1], [], []>} : vector<8x32xbf16>, vector<32x128xbf16>, vector<8x128xf32> -> vector<8x128xf32>
    %158 = vector.broadcast %11 : vector<1x128xf32> to vector<8x128xf32>
    %159 = arith.addf %157, %158 : vector<8x128xf32>
    %cst_59 = arith.constant 0.000000e+00 : f32
    %160 = vector.broadcast %cst_59 : f32 to vector<8x128xf32>
    %161 = arith.maximumf %159, %160 : vector<8x128xf32>
    %162 = arith.truncf %161 : vector<8x128xf32> to vector<8x128xbf16>
    %cst_60 = arith.constant dense<0.000000e+00> : vector<8x32xf32>
    %163 = tpu.matmul %162, %12, %cst_60 {dimension_numbers = #tpu.dot_dimension_numbers<[1], [0], [0], [1], [0, 0, 1, 1], [], []>} : vector<8x128xbf16>, vector<128x32xbf16>, vector<8x32xf32> -> vector<8x32xf32>
    %164 = vector.broadcast %13 : vector<1x32xf32> to vector<8x32xf32>
    %165 = arith.addf %163, %164 : vector<8x32xf32>
    %cst_61 = arith.constant 0.000000e+00 : f32
    %166 = vector.broadcast %cst_61 : f32 to vector<8x32xf32>
    %167 = arith.maximumf %165, %166 : vector<8x32xf32>
    %168 = arith.addf %133, %167 : vector<8x32xf32>
    %169 = arith.truncf %168 : vector<8x32xf32> to vector<8x32xbf16>
    %cst_62 = arith.constant dense<0.000000e+00> : vector<8x128xf32>
    %170 = tpu.matmul %169, %14, %cst_62 {dimension_numbers = #tpu.dot_dimension_numbers<[1], [0], [0], [1], [0, 0, 1, 1], [], []>} : vector<8x32xbf16>, vector<32x128xbf16>, vector<8x128xf32> -> vector<8x128xf32>
    %171 = vector.broadcast %15 : vector<1x128xf32> to vector<8x128xf32>
    %172 = arith.addf %170, %171 : vector<8x128xf32>
    %173 = vector.shape_cast %172 : vector<8x128xf32> to vector<1x8x128xf32>
    %174 = arith.truncf %173 : vector<1x8x128xf32> to vector<1x8x128xbf16>
    %c0_63 = arith.constant 0 : index
    %c0_64 = arith.constant 0 : index
    %c0_65 = arith.constant 0 : index
    %175 = vector.load %arg16[%c0_63, %c0_64, %c0_65] : memref<1x8x128xbf16, #tpu.memory_space<vmem>>, vector<1x8x128xbf16>
    tpu.vector_store %arg16[%c0_63, %c0_64, %c0_65], %174 {strides = array<i32>} : memref<1x8x128xbf16, #tpu.memory_space<vmem>>, vector<1x8x128xbf16>,
    return
  }
  func.func @transform_0(%arg0: i32) -> (i32, i32, i32) {
    %c0_i32 = arith.constant 0 : i32
    %c0_i32_0 = arith.constant 0 : i32
    %c0_i32_1 = arith.constant 0 : i32
    return %arg0, %c0_i32, %c0_i32_0 : i32, i32, i32
  }
  func.func @transform_1(%arg0: i32) -> (i32, i32) {
    %c0_i32 = arith.constant 0 : i32
    %c0_i32_0 = arith.constant 0 : i32
    %c0_i32_1 = arith.constant 0 : i32
    return %c0_i32, %c0_i32_0 : i32, i32
  }
  func.func @transform_2(%arg0: i32) -> (i32, i32) {
    %c0_i32 = arith.constant 0 : i32
    %c0_i32_0 = arith.constant 0 : i32
    %c0_i32_1 = arith.constant 0 : i32
    return %c0_i32, %c0_i32_0 : i32, i32
  }
  func.func @transform_3(%arg0: i32) -> (i32, i32) {
    %c0_i32 = arith.constant 0 : i32
    %c0_i32_0 = arith.constant 0 : i32
    %c0_i32_1 = arith.constant 0 : i32
    return %c0_i32, %c0_i32_0 : i32, i32
  }
  func.func @transform_4(%arg0: i32) -> (i32, i32) {
    %c0_i32 = arith.constant 0 : i32
    %c0_i32_0 = arith.constant 0 : i32
    %c0_i32_1 = arith.constant 0 : i32
    return %c0_i32, %c0_i32_0 : i32, i32
  }
  func.func @transform_5(%arg0: i32) -> (i32, i32) {
    %c0_i32 = arith.constant 0 : i32
    %c0_i32_0 = arith.constant 0 : i32
    %c0_i32_1 = arith.constant 0 : i32
    return %c0_i32, %c0_i32_0 : i32, i32
  }
  func.func @transform_6(%arg0: i32) -> (i32, i32) {
    %c0_i32 = arith.constant 0 : i32
    %c0_i32_0 = arith.constant 0 : i32
    %c0_i32_1 = arith.constant 0 : i32
    return %c0_i32, %c0_i32_0 : i32, i32
  }
  func.func @transform_7(%arg0: i32) -> (i32, i32) {
    %c0_i32 = arith.constant 0 : i32
    %c0_i32_0 = arith.constant 0 : i32
    %c0_i32_1 = arith.constant 0 : i32
    return %c0_i32, %c0_i32_0 : i32, i32
  }
  func.func @transform_8(%arg0: i32) -> (i32, i32) {
    %c0_i32 = arith.constant 0 : i32
    %c0_i32_0 = arith.constant 0 : i32
    %c0_i32_1 = arith.constant 0 : i32
    return %c0_i32, %c0_i32_0 : i32, i32
  }
  func.func @transform_9(%arg0: i32) -> (i32, i32) {
    %c0_i32 = arith.constant 0 : i32
    %c0_i32_0 = arith.constant 0 : i32
    %c0_i32_1 = arith.constant 0 : i32
    return %c0_i32, %c0_i32_0 : i32, i32
  }
  func.func @transform_10(%arg0: i32) -> (i32, i32) {
    %c0_i32 = arith.constant 0 : i32
    %c0_i32_0 = arith.constant 0 : i32
    %c0_i32_1 = arith.constant 0 : i32
    return %c0_i32, %c0_i32_0 : i32, i32
  }
  func.func @transform_11(%arg0: i32) -> (i32, i32) {
    %c0_i32 = arith.constant 0 : i32
    %c0_i32_0 = arith.constant 0 : i32
    %c0_i32_1 = arith.constant 0 : i32
    return %c0_i32, %c0_i32_0 : i32, i32
  }
  func.func @transform_12(%arg0: i32) -> (i32, i32) {
    %c0_i32 = arith.constant 0 : i32
    %c0_i32_0 = arith.constant 0 : i32
    %c0_i32_1 = arith.constant 0 : i32
    return %c0_i32, %c0_i32_0 : i32, i32
  }
  func.func @transform_13(%arg0: i32) -> (i32, i32) {
    %c0_i32 = arith.constant 0 : i32
    %c0_i32_0 = arith.constant 0 : i32
    %c0_i32_1 = arith.constant 0 : i32
    return %c0_i32, %c0_i32_0 : i32, i32
  }
  func.func @transform_14(%arg0: i32) -> (i32, i32) {
    %c0_i32 = arith.constant 0 : i32
    %c0_i32_0 = arith.constant 0 : i32
    %c0_i32_1 = arith.constant 0 : i32
    return %c0_i32, %c0_i32_0 : i32, i32
  }
  func.func @transform_15(%arg0: i32) -> (i32, i32, i32) {
    %c0_i32 = arith.constant 0 : i32
    %c0_i32_0 = arith.constant 0 : i32
    %c0_i32_1 = arith.constant 0 : i32
    return %arg0, %c0_i32, %c0_i32_0 : i32, i32, i32
  }
}

</mosaic_0001>

<bundles_post_ra>
// kernel: tpu_custom_call.1
= control target key start
LH: loop header
LB: loop body
LE: loop exit
PB: predicated region body
PF: predicated region fallthrough
CT: control target
= control target key end

     0   :  { %s1863_s0 = inlined_call_operand.hbm [shape: bf16[2,8,32], index: 0, kind: input, shape index: {}]   ;;  %s1864_s1 = inlined_call_operand.vmem [shape: bf16[32,32], index: 1, kind: input, shape index: {}]   ;;  %s1865_s2 = inlined_call_operand.vmem [shape: f32[1,32], index: 2, kind: input, shape index: {}]   ;;  %s1866_s3 = inlined_call_operand.vmem [shape: f32[1,32], index: 3, kind: input, shape index: {}]   ;;  %s1867_s4 = inlined_call_operand.vmem [shape: f32[1,32], index: 4, kind: input, shape index: {}]   ;;  %s1868_s5 = inlined_call_operand.vmem [shape: bf16[32,96], index: 5, kind: input, shape index: {}]   ;;  %s1869_s6 = inlined_call_operand.vmem [shape: f32[1,96], index: 6, kind: input, shape index: {}]   ;;  %s1870_s7 = inlined_call_operand.vmem [shape: bf16[32,32], index: 7, kind: input, shape index: {}]   ;;  %s1871_s8 = inlined_call_operand.vmem [shape: f32[1,32], index: 8, kind: input, shape index: {}]   ;;  %s1872_s9 = inlined_call_operand.vmem [shape: bf16[32,128], index: 9, kind: input, shape index: {}]   ;;  %s1873_s10 = inlined_call_operand.vmem [shape: f32[1,128], index: 10, kind: input, shape index: {}]   ;;  %s1874_s11 = inlined_call_operand.vmem [shape: bf16[128,32], index: 11, kind: input, shape index: {}]   ;;  %s1875_s12 = inlined_call_operand.vmem [shape: f32[1,32], index: 12, kind: input, shape index: {}]   ;;  %s1876_s13 = inlined_call_operand.vmem [shape: bf16[32,128], index: 13, kind: input, shape index: {}]   ;;  %s1877_s14 = inlined_call_operand.vmem [shape: f32[1,128], index: 14, kind: input, shape index: {}]   ;;  %s1878_s15 = inlined_call_operand.hbm [shape: bf16[2,8,128], index: 15, kind: output, shape index: {}]  }
   0x1   :  { %1887 = sst [smem:[#allocation14_spill]] %s1875_s12 }
   0x2   :  { %1888 = sst [smem:[#allocation15_spill]] %s1877_s14 }
   0x3   :  { %1889 = sst [smem:[#allocation16_spill]] %s1878_s15 }
   0x4   :  { %20 = vsyncpa [#allocation3], 0 }
   0x5   :  { %22 = vsyncpa [#allocation3 + $0x1], 0 }
   0x6   :  { %23 = vsyncpa [#allocation4], 0 }
   0x7   :  { %25 = vsyncpa [#allocation4 + $0x1], 0  ;;  %s1580_s18 = smov 0   ;;  %s1582_s19 = smov 0  }
   0x8   :  { %s1584_s20 = smov 0   ;;  %s1586_s21 = smov 0  }
   0x9 LB: > { %1890 = sst [smem:[#allocation8_spill]] %s1471_s18  ;;  %s1601_s22 = sadd.s32 4294967295, %s1483_s21   ;;  %s1483_s21 = sphi %s1586_s21, %s1908_s21   ;;  %s1479_s20 = sphi %s1584_s20, %s1910_s20   ;;  %s1475_s19 = sphi %s1582_s19, %s1912_s19   ;;  %s1471_s18 = sphi %s1580_s18, %s1911_s18  }
   0xa   : > { %1891 = sst [smem:[#allocation9_spill]] %s1479_s20  ;;  %s1181_s23 = sadd.s32 4294967294, %s1483_s21  }
   0xb   : > { %s1605_s24 = sadd.s32 1, %s1483_s21   ;;  %s38_s25 = sadd.s32 1, %s1479_s20 }
   0xc   : > { %1892 = sst [smem:[#allocation10_spill]] %s1605_s24  ;;  %s35_s26 = ssub.s32 %s1483_s21, %s1605_s24 }
   0xd   : > { %p45_p0 = scmp.ne.s32.totalorder %s1479_s20, %s1475_s19  ;;  %p36_p1 = scmp.eq.s32.totalorder %s35_s26, 0 }
   0xe   : > { %p46_p2 = scmp.eq.s32.totalorder %s1483_s21, 0  ;;  %p51_p3 = scmp.ne.s32.totalorder %s1475_s19, %s1471_s18 }
   0xf   : > { %p52_p4 = scmp.eq.s32.totalorder %s1601_s22, 0  ;;  %p369_p7 = scmp.eq.s32.totalorder %s1601_s22, 1 }
  0x10   : > { %s1617_s27 = scalar_select %p36_p1, %s1479_s20, %s38_s25  }
  0x11   : > { %p1619_p5 = por %p46_p2, %p45_p0  ;;  %p1623_p6 = por %p52_p4, %p51_p3 }
  0x12   : > { %1893 = sst [smem:[#allocation11_spill]] %s1617_s27  ;;  %p375_p8 = scmp.eq.s32.totalorder %s1181_s23, 1 }
  0x13   : > { %p1308_p10 = scmp.lt.s32.totalorder %s1483_s21, 2  ;;  %p1630_p11 = por %p369_p7, %p45_p0 }
  0x14   : > { %p1634_p12 = por %p375_p8, %p51_p3  ;;  %s437_s17 = sand.u32 1, %s1479_s20  }
  0x15   : > { %s1896_s30 = scalar_select %p1630_p11, 1, 0 }
  0x16   : > { %s1898_s16 = scalar_select %p1634_p12, 1, 0 }
  0x17   : > { %1897 = sst [smem:[#allocation12_spill]] %s1896_s30  ;;  %s1185_s25 = sshll.u32 %s1483_s21, 2 }
  0x18   : > { %1899 = sst [smem:[#allocation13_spill]] %s1898_s16  ;;  %s1184_s26 = sshll.u32 %s437_s17, 2 }
  0x19   : > { %s445_s18 = scalar_lea.hbm %s1863_s0, %s1185_s25  ;;  %s441_s23 = scalar_lea.vmem [#allocation2], %s1184_s26 }
  0x1a   : > { %s447_s15 = sshll.u32 %s445_s18, 4  ;;  %s449_s14 = sshll.u32 %s441_s23, 4  ;;  %s448_s15 = int_to_ptr.hbm [resolvable:$true] %s447_s15  ;;  %s450_s14 = int_to_ptr.vmem [resolvable:$true] %s449_s14 }
  0x1b   : > { %p1645_p13 = pnand %p1308_p10, %p1619_p5  ;;  %p1186_p0 = scmp.ge.s32.totalorder %s1483_s21, 1 }
  0x1c   : > { %p454_p1 = scmp.lt.s32.totalorder %s1483_s21, 3  ;;  %s438_s20 = scalar_lea.sflag [#allocation3], %s437_s17 }
  0x1d   : > { %s1387_s16 = sshra.s32 %s448_s15, 4  ;;  %p1391_p3 = pneg %p1645_p13  ;;  %s1388_s16 = int_to_ptr.hbm [resolvable:$true] %s1387_s16 }
  0x1e   : > { %s1389_s30 = scalar_lea.hbm %s1388_s16, 4  ;;  %s1394_s27 = scalar_lea.hbm %s1863_s0, 8 }
  0x1f   : > { %p1390_p2 = scmp.ne.s32.totalorder %s1388_s16, %s1389_s30  ;;  %p1395_p5 = scmp.lt.s32.totalorder %s1388_s16, %s1863_s0 }
  0x20   : > { %p1396_p8 = scmp.lt.s32.totalorder %s1394_s27, %s1389_s30 }
  0x21   : > { %p1392_p4 = pnand %p1391_p3, %p1390_p2 }
  0x22   : > { %p1397_p10 = por %p1396_p8, %p1395_p5 }
  0x23   : > { %p1393_p7 = pneg %p1392_p4 }
  0x25   : > { %p1398_p9 = pnand %p1397_p10, %p1393_p7 }
  0x27   : > { %1401 = shalt.err (!%p1398_p9)
}
  0x28   : > { %1303 = dma.hbm_to_vmem [thread:$0]  (!%p1645_p13), %s448_s15, 64, %s450_s14, %s438_s20  }
  0x29   : > { %p455_p2 = pnand %p1186_p0, %p454_p1 }
  0x2a   : > { %s1666_s17 = sand.u32 (!%p455_p2), 1, %s1475_s19  }
  0x2b   : > { %458 = sbr.rel (%p455_p2) target bundleno = 2562 (0xa02), region = 80  ;;  %s1187_s30 = sshll.u32 (!%p455_p2), %s1666_s17, 2 }
  0x2c   : > { %s461_s16 = scalar_lea.sflag (!%p455_p2), [#allocation3], %s1666_s17  ;;  %s464_s26 = scalar_lea.vmem (!%p455_p2), [#allocation2], %s1187_s30 }
  0x30   : > { %1462 = dma.done.wait (%p1623_p6), %s461_s16, 64  }
  0x31   : > { %1464 = vsyncadd (%p1623_p6), %s461_s16, 4294967232  ;;  %v1279_v0 = vld [vmem:[%s1864_s1 + $0x8] sm:$0xff]  ;;  %v1278_v1 = vld [vmem:[%s1864_s1] sm:$0xff]  ;;  %vm573_vm0 = vcmask 261120   ;;  %v1485_v8 = vmov 32.0   ;;  %s1486_s20 = smov 64  }
  0x32   : > { %583 = vmatpush.bf16.msra.mxu0 %v1279_v0  ;;  %v513_v2 = vld [vmem:[%s464_s26] sm:$0xf]  ;;  %1365 = vrcp.f32 %v1485_v8  ;;  %v1281_v20 = vld [vmem:[%s1868_s5 + $0x8] sm:$0xff]  ;;  %s1487_s23 = smov 88   ;;  %s1488_s18 = smov 96   ;;  %vm665_vm5 = vcmask 64512  }
  0x33   : > { %v1357_v3 = vld [vmem:[%s1865_s2] ss:$0 sm:$0xff]  ;;  %652 = vmatpush.bf16.msra.mxu1 %v1281_v20  ;;  %s1489_s29 = smov 80   ;;  %s1490_s24 = smov 120   ;;  %vm702_vm6 = vcmask 1043456   ;;  %vm900_vm7 = vcmask 130048  }
  0x34   : > { %v1280_v21 = vld [vmem:[%s1868_s5] sm:$0xff]  ;;  %s1491_s27 = smov 112   ;;  %s1492_s28 = smov 72   ;;  %vm902_vm8 = vcmask 195584  }
  0x35   : > { %v1705_v31 = vld [vmem:[%s1866_s3] ss:$0 sm:$0xff]  ;;  %s1493_s25 = smov 104   ;;  %s1494_s16 = smov 56  }
  0x36   : > { %584 = vmatpush.bf16.msra.mxu0 %v1278_v1  ;;  %v1710_v34 = vld [vmem:[%s1867_s4] ss:$0 sm:$0xff]  ;;  %s1495_s26 = smov 48   ;;  %s1496_s12 = smov 8  }
  0x37   : > { %653 = vmatpush.bf16.msra.mxu1 %v1280_v21  ;;  %v1360_v38 = vld [vmem:[%s1869_s6] ss:$0 sm:$0xff]  ;;  %s1497_s14 = smov 40   ;;  %s1498_s15 = smov 24  }
  0x38   : > { %v1366_v9 = vpop.eup %1365 }
  0x39   : > { %1197 = vmatmul.msk.bf16.vlgmr.msra.gmra.mxu0 %vm573_vm0, %v513_v2  ;;  %v594_v10 = vmul.f32 32.0, %v1366_v9  ;;  %vm598_vm1 = vweird.f32 %v1366_v9 }
  0x3b   : > { %v595_v11 = vsub.f32 1.0, %v594_v10 }
  0x3d   : > { %v596_v12 = vmul.f32 %v1366_v9, %v595_v11 }
  0x3f   : > { %v597_v13 = vadd.f32 %v1366_v9, %v596_v12 }
  0x41   : > { %v1690_v14 = vsel %vm598_vm1, %v1366_v9, %v597_v13 }
  0xb6   : > { %v586_v4 = vpop.f32.mrf.mxu0 }
  0xb7   : > { %v1686_v5 = vadd.f32 %v1357_v3, %v586_v4 }
  0xb9   : > { %v590_v6 = vsel %vm573_vm0, %v1686_v5, 0.0 }
  0xba   : > { %591 = vadd.xlane.f32.xlu0 %v590_v6 }
  0xbe   : > { %v588_v7 = vpop.f32.mrf.mxu0 }
 0x12d   : > { %v592_v15 = vpop.xlane.xlu0 %591 }
 0x12e   : > { %v600_v16 = vmul.f32 %v1690_v14, %v592_v15 }
 0x130   : > { %v601_v17 = vsub.f32 %v1686_v5, %v600_v16 }
 0x132   : > { %v602_v18 = vmul.f32 %v601_v17, %v601_v17 }
 0x134   : > { %v603_v19 = vsel %vm573_vm0, %v602_v18, 0.0 }
 0x135   : > { %604 = vadd.xlane.f32.xlu0 %v603_v19 }
 0x1a8   : > { %v605_v22 = vpop.xlane.xlu0 %604 }
 0x1a9   : > { %v606_v23 = vmul.f32 %v605_v22, %v1690_v14 }
 0x1ab   : > { %v607_v24 = vadd.f32 1e-05, %v606_v23 }
 0x1ad   : > { %1367 = vrsqrt.f32 %v607_v24  ;;  %vm614_vm3 = vweird.f32 %v607_v24 }
 0x1b3   : > { %v1368_v25 = vpop.eup %1367 }
 0x1b4   : > { %v609_v26 = vmul.f32 %v1368_v25, %v607_v24  ;;  %vm615_vm2 = vweird.f32 %v1368_v25 }
 0x1b5   : > { %vm616_vm4 = vmor %vm614_vm3, %vm615_vm2 }
 0x1b6   : > { %v610_v27 = vmul.f32 %v1368_v25, %v609_v26 }
 0x1b8   : > { %v611_v28 = vmul.f32 0.5, %v610_v27 }
 0x1ba   : > { %v612_v29 = vsub.f32 1.5, %v611_v28 }
 0x1bc   : > { %v613_v30 = vmul.f32 %v1368_v25, %v612_v29 }
 0x1be   : > { %v617_v32 = vsel %vm616_vm4, %v1368_v25, %v613_v30 }
 0x1bf   : > { %v618_v33 = vmul.f32 %v617_v32, %v601_v17 }
 0x1c1   : > { %v622_v35 = vmul.f32 %v1705_v31, %v618_v33 }
 0x1c3   : > { %v626_v36 = vadd.f32 %v1710_v34, %v622_v35 }
 0x1c5   : > { %v627_v37 = vpack.c.bf16 %v626_v36, %v626_v36 }
 0x1c7   : > { %1206 = vmatmul.msk.bf16.vlgmr.msra.gmra.mxu1 %vm573_vm0, %v627_v37 }
 0x244   : > { %v655_v39 = vpop.f32.mrf.mxu1 }
 0x245   : > { %v656_v40 = vadd.f32 %v1360_v38, %v655_v39 }
 0x247   : > { %v659_v41 = vpack.c.bf16 %v656_v40, %v656_v40 }
 0x249   : > { %v661_v42 = vunpack.c.l.b16 %v659_v41 }
 0x24b   : > { %v1718_v43 = vpack.c.b16 %v661_v42, %v661_v42 }
 0x24c   : > { %v657_v44 = vpop.f32.mrf.mxu1 }
 0x24d   : > { %697 = vrot.lane.b32.xlu0 %v1718_v43, %s1486_s20  ;;  %721 = vrot.lane.b32.xlu2 %v1718_v43, %s1487_s23  ;;  %s1499_s20 = smov 16  }
 0x24e   : > { %663 = vrot.lane.b32.xlu1 %v1718_v43, %s1488_s18 }
 0x255   : > { %777 = vrot.lane.b32.xlu0 %v1718_v43, %s1489_s29  ;;  %719 = vrot.lane.b32.xlu2 %v1718_v43, %s1490_s24  ;;  %s1903_s29 = sld [smem:[#allocation16_spill]] }
 0x25d   : > { %775 = vrot.lane.b32.xlu0 %v1718_v43, %s1491_s27  ;;  %833 = vrot.lane.b32.xlu2 %v1718_v43, %s1492_s28  ;;  %s511_s28 = scalar_lea.vmem [#allocation5], %s1187_s30 }
 0x2a7   : > { %v722_v45 = vpop.permute.xlu2 %721 }
 0x2a8   : > { %v727_v46 = vsel %vm665_vm5, %v722_v45, 0 }
 0x2a9   : > { %736 = vmatpush.bf16.xpose.msra.mxu3 %v727_v46 }
 0x2af   : > { %v720_v47 = vpop.permute.xlu2 %719 }
 0x2b0   : > { %1209 = vmatmul.msk.bf16.vlgmr.msra.gmra.mxu3 %vm665_vm5, %v720_v47 }
 0x2b7   : > { %v834_v48 = vpop.permute.xlu2 %833 }
 0x2b8   : > { %v839_v49 = vsel %vm665_vm5, %v834_v48, 0 }
 0x2b9   : > { %848 = vmatpush.bf16.xpose.msrb.mxu3 %v839_v49 }
 0x2bf   : > { %v698_v50 = vpop.permute.xlu0 %697 }
 0x2c0   : > { %v664_v51 = vpop.permute.xlu1 %663  ;;  %v704_v52 = vsel %vm702_vm6, %v698_v50, 0 }
 0x2c1   : > { %v670_v53 = vsel %vm665_vm5, %v664_v51, 0  ;;  %713 = vmatpush.bf16.msrb.mxu1 %v704_v52 }
 0x2c2   : > { %679 = vmatpush.bf16.xpose.msra.mxu2 %v670_v53 }
 0x2c7   : > { %v778_v54 = vpop.permute.xlu0 %777 }
 0x2c8   : > { %v783_v55 = vsel %vm665_vm5, %v778_v54, 0 }
 0x2c9   : > { %1207 = vmatmul.msk.bf16.vlgmr.msra.gmra.mxu2 %vm665_vm5, %v659_v41  ;;  %792 = vmatpush.bf16.xpose.msra.mxu1 %v783_v55 }
 0x2cf   : > { %v776_v16 = vpop.permute.xlu0 %775 }
 0x333   : > { %v738_v56 = vpop.f32.mrf.mxu3 }
 0x334   : > { %v742_v61 = vsel %vm665_vm5, %v738_v56, -inf }
 0x33b   : > { %v740_v57 = vpop.f32.mrf.mxu3 }
 0x34c   : > { %v681_v58 = vpop.f32.mrf.mxu2 }
 0x34d   : > { %v685_v59 = vsel %vm665_vm5, %v681_v58, -inf }
 0x34e   : > { %686 = vmax.xlane.f32.xlu1 %v685_v59 }
 0x354   : > { %v683_v60 = vpop.f32.mrf.mxu2 }
 0x355   : > { %v1283_v60 = vld [vmem:[%s1870_s7 + $0x8] sm:$0xff] }
 0x356   : > { %743 = vmax.xlane.f32.xlu1 %v742_v61  ;;  %v1282_v61 = vld [vmem:[%s1870_s7] sm:$0xff] }
 0x3c1   : > { %v687_v62 = vpop.xlane.xlu1 %686 }
 0x3c2   : > { %v688_v63 = vsub.f32 %v681_v58, %v687_v62 }
 0x3c4   : > { %v689_v0 = vmul.f32 1.442695, %v688_v63 }
 0x3c6   : > { %1369 = vpow2.f32 %v689_v0 }
 0x3c9   : > { %v744_v1 = vpop.xlane.xlu1 %743 }
 0x3ca   : > { %v745_v2 = vsub.f32 %v738_v56, %v744_v1 }
 0x3cc   : > { %v1370_v3 = vpop.eup %1369  ;;  %v746_v4 = vmul.f32 1.442695, %v745_v2 }
 0x3cd   : > { %v691_v6 = vsel %vm665_vm5, %v1370_v3, 0.0 }
 0x3ce   : > { %1371 = vpow2.f32 %v746_v4  ;;  %692 = vadd.xlane.f32.xlu2 %v691_v6  ;;  %v1361_v6 = vld [vmem:[%s1871_s8] ss:$0 sm:$0xff] }
 0x3d4   : > { %v1372_v7 = vpop.eup %1371 }
 0x3d5   : > { %v748_v8 = vsel %vm665_vm5, %v1372_v7, 0.0 }
 0x3d6   : > { %749 = vadd.xlane.f32.xlu1 %v748_v8 }
 0x3e6   : > { %831 = vrot.lane.b32.xlu2 %v1718_v43, %s1493_s25  ;;  %s1108_s25 = sshll.u32 %s511_s28, 4  ;;  %s1109_s25 = int_to_ptr.vmem [resolvable:$true] %s1108_s25 }
 0x3ef   : > { %754 = vrot.lane.b32.xlu1 %v1718_v43, %s1494_s16 }
 0x441   : > { %v693_v9 = vpop.xlane.xlu2 %692 }
 0x442   : > { %1373 = vrcp.f32 %v693_v9 }
 0x448   : > { %v1374_v10 = vpop.eup %1373 }
 0x449   : > { %v695_v11 = vmul.f32 %v1374_v10, %v1370_v3  ;;  %v832_v12 = vpop.permute.xlu2 %831  ;;  %v750_v15 = vpop.xlane.xlu1 %749 }
 0x44a   : > { %1213 = vmatmul.msk.bf16.vlgmr.msrb.gmra.mxu3 %vm665_vm5, %v832_v12  ;;  %1375 = vrcp.f32 %v750_v15 }
 0x44b   : > { %v696_v13 = vpack.c.bf16 %v695_v11, %v695_v11 }
 0x44d   : > { %1208 = vmatmul.msk.bf16.vlgmr.msrb.gmra.mxu1 %vm665_vm5, %v696_v13 }
 0x44e   : > { %929 = vmatpush.bf16.msrb.mxu1 %v1283_v60 }
 0x450   : > { %v1376_v17 = vpop.eup %1375 }
 0x451   : > { %v752_v18 = vmul.f32 %v1376_v17, %v1372_v7 }
 0x452   : > { %930 = vmatpush.bf16.msrb.mxu1 %v1282_v61 }
 0x453   : > { %v753_v21 = vpack.c.bf16 %v752_v18, %v752_v18  ;;  %v1285_v18 = vld [vmem:[%s1872_s9 + $0x8] sm:$0xff] }
 0x45d   : > { %1211 = vmatmul.msk.bf16.vlgmr.msra.gmra.mxu1 %vm665_vm5, %v776_v16 }
 0x461   : > { %v755_v19 = vpop.permute.xlu1 %754 }
 0x462   : > { %v760_v20 = vsel %vm702_vm6, %v755_v19, 0  ;;  %v1293_v19 = vld [vmem:[%s1874_s11 + $0x38] sm:$0xff] }
 0x463   : > { %769 = vmatpush.bf16.msrb.mxu0 %v760_v20  ;;  %1046 = vmatpush.bf16.msra.mxu3 %v1293_v19 }
 0x466   : > { %1210 = vmatmul.msk.bf16.vlgmr.msrb.gmra.mxu0 %vm665_vm5, %v753_v21 }
 0x4ca   : > { %v1745_v22 = vpop.f32.mrf.mxu1 }
 0x4cd   : > { %v850_v23 = vpop.f32.mrf.mxu3 }
 0x4ce   : > { %v854_v24 = vsel %vm665_vm5, %v850_v23, -inf }
 0x4cf   : > { %855 = vmax.xlane.f32.xlu2 %v854_v24  ;;  %v1291_v24 = vld [vmem:[%s1874_s11 + $0x28] sm:$0xff] }
 0x4d2   : > { %v717_v25 = vpop.f32.mrf.mxu1 }
 0x4d3   : > { %v1290_v25 = vld [vmem:[%s1874_s11 + $0x20] sm:$0xff] }
 0x4d5   : > { %v852_v26 = vpop.f32.mrf.mxu3 }
 0x4da   : > { %v794_v27 = vpop.f32.mrf.mxu1 }
 0x4db   : > { %v798_v28 = vsel %vm665_vm5, %v794_v27, -inf }
 0x4dc   : > { %799 = vmax.xlane.f32.xlu0 %v798_v28 }
 0x4e2   : > { %v796_v29 = vpop.f32.mrf.mxu1 }
 0x4e3   : > { %v771_v30 = vpop.f32.mrf.mxu0 }
 0x4e7   : > { %810 = vrot.lane.b32.xlu2 %v1718_v43, %s1495_s26  ;;  %s1901_s26 = sld [smem:[#allocation14_spill]] }
 0x4eb   : > { %v773_v32 = vpop.f32.mrf.mxu0 }
 0x4ef   : > { %888 = vrot.lane.b32.xlu2 %v771_v30, %s1496_s12  ;;  %v1288_v30 = vld [vmem:[%s1874_s11 + $0x10] sm:$0xff]  ;;  %s1275_s12 = sshll.u32 %s1601_s22, 2  ;;  %s1096_s22 = scalar_lea.sflag [#allocation4], %s1666_s17 }
 0x4f0   : > { %s1106_s27 = scalar_lea.hbm %s1903_s29, %s1275_s12 }
 0x4f1   : > { %s1110_s16 = sshll.u32 %s1106_s27, 4  ;;  %s1111_s16 = int_to_ptr.hbm [resolvable:$true] %s1110_s16 }
 0x542   : > { %v856_v33 = vpop.xlane.xlu2 %855 }
 0x543   : > { %v857_v35 = vsub.f32 %v850_v23, %v856_v33 }
 0x545   : > { %v858_v36 = vmul.f32 1.442695, %v857_v35 }
 0x547   : > { %1377 = vpow2.f32 %v858_v36 }
 0x54a   : > { %v811_v37 = vpop.permute.xlu2 %810 }
 0x54b   : > { %v816_v38 = vsel %vm702_vm6, %v811_v37, 0 }
 0x54c   : > { %825 = vmatpush.bf16.msrb.mxu2 %v816_v38 }
 0x54d   : > { %v1378_v39 = vpop.eup %1377 }
 0x54e   : > { %v860_v40 = vsel %vm665_vm5, %v1378_v39, 0.0 }
 0x54f   : > { %v800_v41 = vpop.xlane.xlu0 %799  ;;  %861 = vadd.xlane.f32.xlu0 %v860_v40  ;;  %v1287_v40 = vld [vmem:[%s1874_s11 + $0x8] sm:$0xff] }
 0x550   : > { %v801_v42 = vsub.f32 %v794_v27, %v800_v41  ;;  %986 = vmatpush.bf16.msra.mxu2 %v1285_v18  ;;  %v1286_v41 = vld [vmem:[%s1874_s11] sm:$0xff] }
 0x552   : > { %v802_v44 = vmul.f32 1.442695, %v801_v42  ;;  %v889_v62 = vpop.permute.xlu2 %888  ;;  %v1295_v42 = vld [vmem:[%s1876_s13 + $0x8] sm:$0xff] }
 0x553   : > { %v899_v63 = vsel %vm665_vm5, %v1745_v22, %v889_v62  ;;  %v1292_v22 = vld [vmem:[%s1874_s11 + $0x30] sm:$0xff] }
 0x554   : > { %1379 = vpow2.f32 %v802_v44  ;;  %1047 = vmatpush.bf16.msra.mxu3 %v1292_v22 }
 0x558   : > { %1048 = vmatpush.bf16.msra.mxu3 %v1291_v24 }
 0x55a   : > { %v1380_v45 = vpop.eup %1379 }
 0x55b   : > { %v804_v46 = vsel %vm665_vm5, %v1380_v45, 0.0 }
 0x55c   : > { %805 = vadd.xlane.f32.xlu1 %v804_v46  ;;  %1049 = vmatpush.bf16.msra.mxu3 %v1290_v25 }
 0x563   : > { %866 = vrot.lane.b32.xlu0 %v1718_v43, %s1497_s14 }
 0x5c2   : > { %v862_v47 = vpop.xlane.xlu0 %861 }
 0x5c3   : > { %1381 = vrcp.f32 %v862_v47 }
 0x5c9   : > { %v1382_v49 = vpop.eup %1381 }
 0x5ca   : > { %v864_v50 = vmul.f32 %v1382_v49, %v1378_v39  ;;  %v1363_v49 = vld [vmem:[%s1901_s26] ss:$0 sm:$0xff]  ;;  %s1431_s26 = sshra.s32 %s1111_s16, 4  ;;  %s1432_s26 = int_to_ptr.hbm [resolvable:$true] %s1431_s26 }
 0x5cb   : > { %s1433_s14 = scalar_lea.hbm %s1432_s26, 4  ;;  %p1438_p0 = scmp.lt.s32.totalorder %s1432_s26, %s1903_s29 }
 0x5cc   : > { %v865_v55 = vpack.c.bf16 %v864_v50, %v864_v50  ;;  %p1434_p6 = scmp.ne.s32.totalorder %s1432_s26, %s1433_s14 }
 0x5ce   : > { %p1435_p9 = pnand %p1434_p6, %p1630_p11 }
 0x5cf   : > { %v806_v48 = vpop.xlane.xlu1 %805 }
 0x5d0   : > { %1383 = vrcp.f32 %v806_v48  ;;  %v1294_v48 = vld [vmem:[%s1876_s13] sm:$0xff]  ;;  %p1436_p13 = pneg %p1435_p9 }
 0x5d5   : > { %v867_v51 = vpop.permute.xlu0 %866 }
 0x5d6   : > { %v1384_v52 = vpop.eup %1383  ;;  %v872_v53 = vsel %vm702_vm6, %v867_v51, 0 }
 0x5d7   : > { %v808_v54 = vmul.f32 %v1384_v52, %v1380_v45  ;;  %881 = vmatpush.bf16.msra.mxu0 %v872_v53 }
 0x5d9   : > { %v809_v56 = vpack.c.bf16 %v808_v54, %v808_v54 }
 0x5da   : > { %1214 = vmatmul.msk.bf16.vlgmr.msra.gmra.mxu0 %vm665_vm5, %v865_v55 }
 0x5db   : > { %1212 = vmatmul.msk.bf16.vlgmr.msrb.gmra.mxu2 %vm665_vm5, %v809_v56  ;;  %1086 = vmatpush.bf16.msrb.mxu0 %v1295_v42 }
 0x5df   : > { %1087 = vmatpush.bf16.msrb.mxu0 %v1294_v48 }
 0x657   : > { %v883_v57 = vpop.f32.mrf.mxu0 }
 0x658   : > { %896 = vrot.lane.b32.xlu2 %v883_v57, %s1498_s15 }
 0x65e   : > { %v827_v43 = vpop.f32.mrf.mxu2 }
 0x65f   : > { %v885_v58 = vpop.f32.mrf.mxu0  ;;  %892 = vrot.lane.b32.xlu0 %v827_v43, %s1499_s20  ;;  %s1902_s20 = sld [smem:[#allocation15_spill]] }
 0x665   : > { %v1364_v56 = vld [vmem:[%s1902_s20] ss:$0 sm:$0xff]  ;;  %s1437_s20 = scalar_lea.hbm %s1903_s29, 8 }
 0x666   : > { %v829_v59 = vpop.f32.mrf.mxu2  ;;  %p1439_p1 = scmp.lt.s32.totalorder %s1437_s20, %s1433_s14 }
 0x668   : > { %p1440_p3 = por %p1439_p1, %p1438_p0 }
 0x66a   : > { %p1441_p4 = pnand %p1440_p3, %p1436_p13 }
 0x6b2   : > { %v897_v1 = vpop.permute.xlu2 %896 }
 0x6d1   : > { %v893_v0 = vpop.permute.xlu0 %892 }
 0x6d2   : > { %v901_v2 = vsel %vm900_vm7, %v899_v63, %v893_v0 }
 0x6d3   : > { %v903_v3 = vsel %vm902_vm8, %v901_v2, %v897_v1 }
 0x6d4   : > { %v904_v4 = vpack.c.bf16 %v903_v3, %v903_v3 }
 0x6d6   : > { %1223 = vmatmul.msk.bf16.vlgmr.msrb.gmra.mxu1 %vm573_vm0, %v904_v4 }
 0x753   : > { %v932_v7 = vpop.f32.mrf.mxu1 }
 0x754   : > { %v933_v8 = vadd.f32 %v1361_v6, %v932_v7 }
 0x756   : > { %v1770_v9 = vadd.f32 %v933_v8, %v1686_v5  ;;  %v1284_v5 = vld [vmem:[%s1872_s9] sm:$0xff] }
 0x757   : > { %987 = vmatpush.bf16.msra.mxu2 %v1284_v5 }
 0x758   : > { %v937_v10 = vsel %vm573_vm0, %v1770_v9, 0.0 }
 0x759   : > { %938 = vadd.xlane.f32.xlu0 %v937_v10 }
 0x75b   : > { %v934_v11 = vpop.f32.mrf.mxu1 }
 0x7cc   : > { %v939_v12 = vpop.xlane.xlu0 %938 }
 0x7cd   : > { %v940_v13 = vmul.f32 %v939_v12, %v1690_v14 }
 0x7cf   : > { %v941_v15 = vsub.f32 %v1770_v9, %v940_v13 }
 0x7d1   : > { %v942_v16 = vmul.f32 %v941_v15, %v941_v15 }
 0x7d3   : > { %v943_v17 = vsel %vm573_vm0, %v942_v16, 0.0 }
 0x7d4   : > { %944 = vadd.xlane.f32.xlu1 %v943_v17 }
 0x847   : > { %v945_v20 = vpop.xlane.xlu1 %944 }
 0x848   : > { %v946_v21 = vmul.f32 %v945_v20, %v1690_v14  ;;  %v1289_v14 = vld [vmem:[%s1874_s11 + $0x18] sm:$0xff] }
 0x849   : > { %1050 = vmatpush.bf16.msra.mxu3 %v1289_v14 }
 0x84a   : > { %v947_v23 = vadd.f32 1e-05, %v946_v21 }
 0x84c   : > { %1385 = vrsqrt.f32 %v947_v23  ;;  %vm954_vm10 = vweird.f32 %v947_v23 }
 0x84d   : > { %1051 = vmatpush.bf16.msra.mxu3 %v1288_v30 }
 0x851   : > { %1052 = vmatpush.bf16.msra.mxu3 %v1287_v40 }
 0x852   : > { %v1386_v26 = vpop.eup %1385 }
 0x853   : > { %v949_v27 = vmul.f32 %v1386_v26, %v947_v23  ;;  %vm955_vm9 = vweird.f32 %v1386_v26 }
 0x854   : > { %vm956_vm11 = vmor %vm954_vm10, %vm955_vm9 }
 0x855   : > { %v950_v28 = vmul.f32 %v1386_v26, %v949_v27  ;;  %1053 = vmatpush.bf16.msra.mxu3 %v1286_v41 }
 0x857   : > { %v951_v29 = vmul.f32 0.5, %v950_v28 }
 0x859   : > { %v952_v32 = vsub.f32 1.5, %v951_v29 }
 0x85b   : > { %v953_v33 = vmul.f32 %v1386_v26, %v952_v32 }
 0x85d   : > { %v957_v35 = vsel %vm956_vm11, %v1386_v26, %v953_v33 }
 0x85e   : > { %v958_v36 = vmul.f32 %v957_v35, %v941_v15 }
 0x860   : > { %v959_v37 = vmul.f32 %v1705_v31, %v958_v36  ;;  %v1362_v31 = vld [vmem:[%s1873_s10] ss:$0 sm:$0xff] }
 0x862   : > { %v960_v38 = vadd.f32 %v1710_v34, %v959_v37 }
 0x864   : > { %v961_v39 = vpack.c.bf16 %v960_v38, %v960_v38 }
 0x866   : > { %1232 = vmatmul.msk.bf16.vlgmr.msra.gmra.mxu2 %vm573_vm0, %v961_v39 }
 0x8e9   : > { %v989_v34 = vpop.f32.mrf.mxu2 }
 0x8ea   : > { %v990_v44 = vadd.f32 %v1362_v31, %v989_v34 }
 0x8ec   : > { %v993_v45 = vmax.f32 %v990_v44, 0.0 }
 0x8ee   : > { %v994_v46 = vpack.c.bf16 %v993_v45, %v993_v45 }
 0x8f0   : > { %1054 = vmatmul.bf16.vlgmr.msra.gmra.mxu3 %v994_v46 }
 0x8f1   : > { %v991_v47 = vpop.f32.mrf.mxu2 }
 0x973   : > { %v1055_v50 = vpop.f32.mrf.mxu3 }
 0x974   : > { %v1056_v51 = vadd.f32 %v1363_v49, %v1055_v50 }
 0x976   : > { %v1059_v52 = vmax.f32 %v1056_v51, 0.0 }
 0x978   : > { %v1060_v53 = vadd.f32 %v1059_v52, %v1770_v9 }
 0x97a   : > { %v1061_v54 = vpack.c.bf16 %v1060_v53, %v1060_v53 }
 0x97b   : > { %v1057_v55 = vpop.f32.mrf.mxu3 }
 0x97c   : > { %1273 = vmatmul.msk.bf16.vlgmr.msrb.gmra.mxu0 %vm573_vm0, %v1061_v54 }
 0x9f9   : > { %v1089_v57 = vpop.f32.mrf.mxu0 }
 0x9fa   : > { %v1090_v43 = vadd.f32 %v1364_v56, %v1089_v57 }
 0x9fc   : > { %v1093_v58 = vpack.c.bf16 %v1090_v43, %v1090_v43 }
 0x9fe   : > { %1094 = vst [vmem:[%s511_s28] sm:$0xf] %v1093_v58 }
 0x9ff   : > { %1444 = shalt.err (!%p1441_p4)
}
 0xa00   : > { %1298 = dma.vmem_to_hbm [thread:$0]  (%p1630_p11), %s1109_s25, 64, %s1111_s16, %s1096_s22  }
 0xa01   : > { %v1091_v59 = vpop.f32.mrf.mxu0 }
 0xa02 PF: > { %s1905_s17 = sld [smem:[#allocation8_spill]]  ;;  %p1907_p7 = scmp.ge.s32.totalorder %s1483_s21, 2 }
 0xa04   : > { %p1305_p5 = pnand %p1907_p7, %p1634_p12 }
 0xa06   : > { %p1306_p8 = pneg %p1305_p5 }
 0xa08   : > { %s1122_s27 = sand.u32 1, %s1905_s17  }
 0xa09   : > { %s1123_s28 = scalar_lea.sflag [#allocation4], %s1122_s27 }
 0xa0a   : > { %1466 = dma.done.wait (%p1306_p8), %s1123_s28, 64  }
 0xa0b   : > { %1468 = vsyncadd (%p1306_p8), %s1123_s28, 4294967232  ;;  %s1908_s21 = sld [smem:[#allocation10_spill]]  ;;  %s1911_s18 = smov %s1475_s19 }
 0xa0c   : > { %s1909_s26 = sld [smem:[#allocation9_spill]] }
 0xa0d   : > { %s1910_s20 = sld [smem:[#allocation11_spill]] }
 0xa11   : > { %p28_p10 = scmp.ge.s32.totalorder %s1908_s21, 4  }
 0xa12   : > { %s1912_s19 = smov %s1909_s26 }
 0xa13   :  { %30 = sbr.rel (!%p28_p10) target bundleno = 9 (0x9), region = 125 }
 0xa18   :  { %1129 = vsyncpa [#allocation3], 1 }
 0xa19   :  { %1131 = vsyncpa [#allocation3 + $0x1], 1 }
 0xa1a   :  { %1132 = vsyncpa [#allocation4], 1 }
 0xa1b   :  { %1134 = vsyncpa [#allocation4 + $0x1], 1 }

// kernel: tpu_custom_call.1
= control target key start
LH: loop header
LB: loop body
LE: loop exit
PB: predicated region body
PF: predicated region fallthrough
CT: control target
= control target key end

     0   :  { %s1863_s0 = inlined_call_operand.hbm [shape: bf16[2,8,32], index: 0, kind: input, shape index: {}]   ;;  %s1864_s1 = inlined_call_operand.vmem [shape: bf16[32,32], index: 1, kind: input, shape index: {}]   ;;  %s1865_s2 = inlined_call_operand.vmem [shape: f32[1,32], index: 2, kind: input, shape index: {}]   ;;  %s1866_s3 = inlined_call_operand.vmem [shape: f32[1,32], index: 3, kind: input, shape index: {}]   ;;  %s1867_s4 = inlined_call_operand.vmem [shape: f32[1,32], index: 4, kind: input, shape index: {}]   ;;  %s1868_s5 = inlined_call_operand.vmem [shape: bf16[32,96], index: 5, kind: input, shape index: {}]   ;;  %s1869_s6 = inlined_call_operand.vmem [shape: f32[1,96], index: 6, kind: input, shape index: {}]   ;;  %s1870_s7 = inlined_call_operand.vmem [shape: bf16[32,32], index: 7, kind: input, shape index: {}]   ;;  %s1871_s8 = inlined_call_operand.vmem [shape: f32[1,32], index: 8, kind: input, shape index: {}]   ;;  %s1872_s9 = inlined_call_operand.vmem [shape: bf16[32,128], index: 9, kind: input, shape index: {}]   ;;  %s1873_s10 = inlined_call_operand.vmem [shape: f32[1,128], index: 10, kind: input, shape index: {}]   ;;  %s1874_s11 = inlined_call_operand.vmem [shape: bf16[128,32], index: 11, kind: input, shape index: {}]   ;;  %s1875_s12 = inlined_call_operand.vmem [shape: f32[1,32], index: 12, kind: input, shape index: {}]   ;;  %s1876_s13 = inlined_call_operand.vmem [shape: bf16[32,128], index: 13, kind: input, shape index: {}]   ;;  %s1877_s14 = inlined_call_operand.vmem [shape: f32[1,128], index: 14, kind: input, shape index: {}]   ;;  %s1878_s15 = inlined_call_operand.hbm [shape: bf16[2,8,128], index: 15, kind: output, shape index: {}]  }
   0x1   :  { %1887 = sst [smem:[#allocation14_spill]] %s1875_s12 }
   0x2   :  { %1888 = sst [smem:[#allocation15_spill]] %s1877_s14 }
   0x3   :  { %1889 = sst [smem:[#allocation16_spill]] %s1878_s15 }
   0x4   :  { %20 = vsyncpa [#allocation3], 0 }
   0x5   :  { %22 = vsyncpa [#allocation3 + $0x1], 0 }
   0x6   :  { %23 = vsyncpa [#allocation4], 0 }
   0x7   :  { %25 = vsyncpa [#allocation4 + $0x1], 0  ;;  %s1580_s18 = smov 0   ;;  %s1582_s19 = smov 0  }
   0x8   :  { %s1584_s20 = smov 0   ;;  %s1586_s21 = smov 0  }
   0x9 LB: > { %1890 = sst [smem:[#allocation8_spill]] %s1471_s18  ;;  %s1601_s22 = sadd.s32 4294967295, %s1483_s21   ;;  %s1483_s21 = sphi %s1586_s21, %s1908_s21   ;;  %s1479_s20 = sphi %s1584_s20, %s1910_s20   ;;  %s1475_s19 = sphi %s1582_s19, %s1912_s19   ;;  %s1471_s18 = sphi %s1580_s18, %s1911_s18  }
   0xa   : > { %1891 = sst [smem:[#allocation9_spill]] %s1479_s20  ;;  %s1181_s23 = sadd.s32 4294967294, %s1483_s21  }
   0xb   : > { %s1605_s24 = sadd.s32 1, %s1483_s21   ;;  %s38_s25 = sadd.s32 1, %s1479_s20 }
   0xc   : > { %1892 = sst [smem:[#allocation10_spill]] %s1605_s24  ;;  %s35_s26 = ssub.s32 %s1483_s21, %s1605_s24 }
   0xd   : > { %p45_p0 = scmp.ne.s32.totalorder %s1479_s20, %s1475_s19  ;;  %p36_p1 = scmp.eq.s32.totalorder %s35_s26, 0 }
   0xe   : > { %p46_p2 = scmp.eq.s32.totalorder %s1483_s21, 0  ;;  %p51_p3 = scmp.ne.s32.totalorder %s1475_s19, %s1471_s18 }
   0xf   : > { %p52_p4 = scmp.eq.s32.totalorder %s1601_s22, 0  ;;  %p369_p7 = scmp.eq.s32.totalorder %s1601_s22, 1 }
  0x10   : > { %s1617_s27 = scalar_select %p36_p1, %s1479_s20, %s38_s25  }
  0x11   : > { %p1619_p5 = por %p46_p2, %p45_p0  ;;  %p1623_p6 = por %p52_p4, %p51_p3 }
  0x12   : > { %1893 = sst [smem:[#allocation11_spill]] %s1617_s27  ;;  %p375_p8 = scmp.eq.s32.totalorder %s1181_s23, 1 }
  0x13   : > { %p1308_p10 = scmp.lt.s32.totalorder %s1483_s21, 2  ;;  %p1630_p11 = por %p369_p7, %p45_p0 }
  0x14   : > { %p1634_p12 = por %p375_p8, %p51_p3  ;;  %s437_s17 = sand.u32 1, %s1479_s20  }
  0x15   : > { %s1896_s30 = scalar_select %p1630_p11, 1, 0 }
  0x16   : > { %s1898_s16 = scalar_select %p1634_p12, 1, 0 }
  0x17   : > { %1897 = sst [smem:[#allocation12_spill]] %s1896_s30  ;;  %s1185_s25 = sshll.u32 %s1483_s21, 2 }
  0x18   : > { %1899 = sst [smem:[#allocation13_spill]] %s1898_s16  ;;  %s1184_s26 = sshll.u32 %s437_s17, 2 }
  0x19   : > { %s445_s18 = scalar_lea.hbm %s1863_s0, %s1185_s25  ;;  %s441_s23 = scalar_lea.vmem [#allocation2], %s1184_s26 }
  0x1a   : > { %s447_s15 = sshll.u32 %s445_s18, 4  ;;  %s449_s14 = sshll.u32 %s441_s23, 4  ;;  %s448_s15 = int_to_ptr.hbm [resolvable:$true] %s447_s15  ;;  %s450_s14 = int_to_ptr.vmem [resolvable:$true] %s449_s14 }
  0x1b   : > { %p1645_p13 = pnand %p1308_p10, %p1619_p5  ;;  %p1186_p0 = scmp.ge.s32.totalorder %s1483_s21, 1 }
  0x1c   : > { %p454_p1 = scmp.lt.s32.totalorder %s1483_s21, 3  ;;  %s438_s20 = scalar_lea.sflag [#allocation3], %s437_s17 }
  0x1d   : > { %s1387_s16 = sshra.s32 %s448_s15, 4  ;;  %p1391_p3 = pneg %p1645_p13  ;;  %s1388_s16 = int_to_ptr.hbm [resolvable:$true] %s1387_s16 }
  0x1e   : > { %s1389_s30 = scalar_lea.hbm %s1388_s16, 4  ;;  %s1394_s27 = scalar_lea.hbm %s1863_s0, 8 }
  0x1f   : > { %p1390_p2 = scmp.ne.s32.totalorder %s1388_s16, %s1389_s30  ;;  %p1395_p5 = scmp.lt.s32.totalorder %s1388_s16, %s1863_s0 }
  0x20   : > { %p1396_p8 = scmp.lt.s32.totalorder %s1394_s27, %s1389_s30 }
  0x21   : > { %p1392_p4 = pnand %p1391_p3, %p1390_p2 }
  0x22   : > { %p1397_p10 = por %p1396_p8, %p1395_p5 }
  0x23   : > { %p1393_p7 = pneg %p1392_p4 }
  0x25   : > { %p1398_p9 = pnand %p1397_p10, %p1393_p7 }
  0x27   : > { %1401 = shalt.err (!%p1398_p9)
}
  0x28   : > { %1303 = dma.hbm_to_vmem [thread:$0]  (!%p1645_p13), %s448_s15, 64, %s450_s14, %s438_s20  }
  0x29   : > { %p455_p2 = pnand %p1186_p0, %p454_p1 }
  0x2a   : > { %s1666_s17 = sand.u32 (!%p455_p2), 1, %s1475_s19  }
  0x2b   : > { %458 = sbr.rel (%p455_p2) target bundleno = 2562 (0xa02), region = 80  ;;  %s1187_s30 = sshll.u32 (!%p455_p2), %s1666_s17, 2 }
  0x2c   : > { %s461_s16 = scalar_lea.sflag (!%p455_p2), [#allocation3], %s1666_s17  ;;  %s464_s26 = scalar_lea.vmem (!%p455_p2), [#allocation2], %s1187_s30 }
  0x30   : > { %1462 = dma.done.wait (%p1623_p6), %s461_s16, 64  }
  0x31   : > { %1464 = vsyncadd (%p1623_p6), %s461_s16, 4294967232  ;;  %v1279_v0 = vld [vmem:[%s1864_s1 + $0x8] sm:$0xff]  ;;  %v1278_v1 = vld [vmem:[%s1864_s1] sm:$0xff]  ;;  %vm573_vm0 = vcmask 261120   ;;  %v1485_v8 = vmov 32.0   ;;  %s1486_s20 = smov 64  }
  0x32   : > { %583 = vmatpush.bf16.msra.mxu0 %v1279_v0  ;;  %v513_v2 = vld [vmem:[%s464_s26] sm:$0xf]  ;;  %1365 = vrcp.f32 %v1485_v8  ;;  %v1281_v20 = vld [vmem:[%s1868_s5 + $0x8] sm:$0xff]  ;;  %s1487_s23 = smov 88   ;;  %s1488_s18 = smov 96   ;;  %vm665_vm5 = vcmask 64512  }
  0x33   : > { %v1357_v3 = vld [vmem:[%s1865_s2] ss:$0 sm:$0xff]  ;;  %652 = vmatpush.bf16.msra.mxu1 %v1281_v20  ;;  %s1489_s29 = smov 80   ;;  %s1490_s24 = smov 120   ;;  %vm702_vm6 = vcmask 1043456   ;;  %vm900_vm7 = vcmask 130048  }
  0x34   : > { %v1280_v21 = vld [vmem:[%s1868_s5] sm:$0xff]  ;;  %s1491_s27 = smov 112   ;;  %s1492_s28 = smov 72   ;;  %vm902_vm8 = vcmask 195584  }
  0x35   : > { %v1705_v31 = vld [vmem:[%s1866_s3] ss:$0 sm:$0xff]  ;;  %s1493_s25 = smov 104   ;;  %s1494_s16 = smov 56  }
  0x36   : > { %584 = vmatpush.bf16.msra.mxu0 %v1278_v1  ;;  %v1710_v34 = vld [vmem:[%s1867_s4] ss:$0 sm:$0xff]  ;;  %s1495_s26 = smov 48   ;;  %s1496_s12 = smov 8  }
  0x37   : > { %653 = vmatpush.bf16.msra.mxu1 %v1280_v21  ;;  %v1360_v38 = vld [vmem:[%s1869_s6] ss:$0 sm:$0xff]  ;;  %s1497_s14 = smov 40   ;;  %s1498_s15 = smov 24  }
  0x38   : > { %v1366_v9 = vpop.eup %1365 }
  0x39   : > { %1197 = vmatmul.msk.bf16.vlgmr.msra.gmra.mxu0 %vm573_vm0, %v513_v2  ;;  %v594_v10 = vmul.f32 32.0, %v1366_v9  ;;  %vm598_vm1 = vweird.f32 %v1366_v9 }
  0x3b   : > { %v595_v11 = vsub.f32 1.0, %v594_v10 }
  0x3d   : > { %v596_v12 = vmul.f32 %v1366_v9, %v595_v11 }
  0x3f   : > { %v597_v13 = vadd.f32 %v1366_v9, %v596_v12 }
  0x41   : > { %v1690_v14 = vsel %vm598_vm1, %v1366_v9, %v597_v13 }
  0xb6   : > { %v586_v4 = vpop.f32.mrf.mxu0 }
  0xb7   : > { %v1686_v5 = vadd.f32 %v1357_v3, %v586_v4 }
  0xb9   : > { %v590_v6 = vsel %vm573_vm0, %v1686_v5, 0.0 }
  0xba   : > { %591 = vadd.xlane.f32.xlu0 %v590_v6 }
  0xbe   : > { %v588_v7 = vpop.f32.mrf.mxu0 }
 0x12d   : > { %v592_v15 = vpop.xlane.xlu0 %591 }
 0x12e   : > { %v600_v16 = vmul.f32 %v1690_v14, %v592_v15 }
 0x130   : > { %v601_v17 = vsub.f32 %v1686_v5, %v600_v16 }
 0x132   : > { %v602_v18 = vmul.f32 %v601_v17, %v601_v17 }
 0x134   : > { %v603_v19 = vsel %vm573_vm0, %v602_v18, 0.0 }
 0x135   : > { %604 = vadd.xlane.f32.xlu0 %v603_v19 }
 0x1a8   : > { %v605_v22 = vpop.xlane.xlu0 %604 }
 0x1a9   : > { %v606_v23 = vmul.f32 %v605_v22, %v1690_v14 }
 0x1ab   : > { %v607_v24 = vadd.f32 1e-05, %v606_v23 }
 0x1ad   : > { %1367 = vrsqrt.f32 %v607_v24  ;;  %vm614_vm3 = vweird.f32 %v607_v24 }
 0x1b3   : > { %v1368_v25 = vpop.eup %1367 }
 0x1b4   : > { %v609_v26 = vmul.f32 %v1368_v25, %v607_v24  ;;  %vm615_vm2 = vweird.f32 %v1368_v25 }
 0x1b5   : > { %vm616_vm4 = vmor %vm614_vm3, %vm615_vm2 }
 0x1b6   : > { %v610_v27 = vmul.f32 %v1368_v25, %v609_v26 }
 0x1b8   : > { %v611_v28 = vmul.f32 0.5, %v610_v27 }
 0x1ba   : > { %v612_v29 = vsub.f32 1.5, %v611_v28 }
 0x1bc   : > { %v613_v30 = vmul.f32 %v1368_v25, %v612_v29 }
 0x1be   : > { %v617_v32 = vsel %vm616_vm4, %v1368_v25, %v613_v30 }
 0x1bf   : > { %v618_v33 = vmul.f32 %v617_v32, %v601_v17 }
 0x1c1   : > { %v622_v35 = vmul.f32 %v1705_v31, %v618_v33 }
 0x1c3   : > { %v626_v36 = vadd.f32 %v1710_v34, %v622_v35 }
 0x1c5   : > { %v627_v37 = vpack.c.bf16 %v626_v36, %v626_v36 }
 0x1c7   : > { %1206 = vmatmul.msk.bf16.vlgmr.msra.gmra.mxu1 %vm573_vm0, %v627_v37 }
 0x244   : > { %v655_v39 = vpop.f32.mrf.mxu1 }
 0x245   : > { %v656_v40 = vadd.f32 %v1360_v38, %v655_v39 }
 0x247   : > { %v659_v41 = vpack.c.bf16 %v656_v40, %v656_v40 }
 0x249   : > { %v661_v42 = vunpack.c.l.b16 %v659_v41 }
 0x24b   : > { %v1718_v43 = vpack.c.b16 %v661_v42, %v661_v42 }
 0x24c   : > { %v657_v44 = vpop.f32.mrf.mxu1 }
 0x24d   : > { %697 = vrot.lane.b32.xlu0 %v1718_v43, %s1486_s20  ;;  %721 = vrot.lane.b32.xlu2 %v1718_v43, %s1487_s23  ;;  %s1499_s20 = smov 16  }
 0x24e   : > { %663 = vrot.lane.b32.xlu1 %v1718_v43, %s1488_s18 }
 0x255   : > { %777 = vrot.lane.b32.xlu0 %v1718_v43, %s1489_s29  ;;  %719 = vrot.lane.b32.xlu2 %v1718_v43, %s1490_s24  ;;  %s1903_s29 = sld [smem:[#allocation16_spill]] }
 0x25d   : > { %775 = vrot.lane.b32.xlu0 %v1718_v43, %s1491_s27  ;;  %833 = vrot.lane.b32.xlu2 %v1718_v43, %s1492_s28  ;;  %s511_s28 = scalar_lea.vmem [#allocation5], %s1187_s30 }
 0x2a7   : > { %v722_v45 = vpop.permute.xlu2 %721 }
 0x2a8   : > { %v727_v46 = vsel %vm665_vm5, %v722_v45, 0 }
 0x2a9   : > { %736 = vmatpush.bf16.xpose.msra.mxu3 %v727_v46 }
 0x2af   : > { %v720_v47 = vpop.permute.xlu2 %719 }
 0x2b0   : > { %1209 = vmatmul.msk.bf16.vlgmr.msra.gmra.mxu3 %vm665_vm5, %v720_v47 }
 0x2b7   : > { %v834_v48 = vpop.permute.xlu2 %833 }
 0x2b8   : > { %v839_v49 = vsel %vm665_vm5, %v834_v48, 0 }
 0x2b9   : > { %848 = vmatpush.bf16.xpose.msrb.mxu3 %v839_v49 }
 0x2bf   : > { %v698_v50 = vpop.permute.xlu0 %697 }
 0x2c0   : > { %v664_v51 = vpop.permute.xlu1 %663  ;;  %v704_v52 = vsel %vm702_vm6, %v698_v50, 0 }
 0x2c1   : > { %v670_v53 = vsel %vm665_vm5, %v664_v51, 0  ;;  %713 = vmatpush.bf16.msrb.mxu1 %v704_v52 }
 0x2c2   : > { %679 = vmatpush.bf16.xpose.msra.mxu2 %v670_v53 }
 0x2c7   : > { %v778_v54 = vpop.permute.xlu0 %777 }
 0x2c8   : > { %v783_v55 = vsel %vm665_vm5, %v778_v54, 0 }
 0x2c9   : > { %1207 = vmatmul.msk.bf16.vlgmr.msra.gmra.mxu2 %vm665_vm5, %v659_v41  ;;  %792 = vmatpush.bf16.xpose.msra.mxu1 %v783_v55 }
 0x2cf   : > { %v776_v16 = vpop.permute.xlu0 %775 }
 0x333   : > { %v738_v56 = vpop.f32.mrf.mxu3 }
 0x334   : > { %v742_v61 = vsel %vm665_vm5, %v738_v56, -inf }
 0x33b   : > { %v740_v57 = vpop.f32.mrf.mxu3 }
 0x34c   : > { %v681_v58 = vpop.f32.mrf.mxu2 }
 0x34d   : > { %v685_v59 = vsel %vm665_vm5, %v681_v58, -inf }
 0x34e   : > { %686 = vmax.xlane.f32.xlu1 %v685_v59 }
 0x354   : > { %v683_v60 = vpop.f32.mrf.mxu2 }
 0x355   : > { %v1283_v60 = vld [vmem:[%s1870_s7 + $0x8] sm:$0xff] }
 0x356   : > { %743 = vmax.xlane.f32.xlu1 %v742_v61  ;;  %v1282_v61 = vld [vmem:[%s1870_s7] sm:$0xff] }
 0x3c1   : > { %v687_v62 = vpop.xlane.xlu1 %686 }
 0x3c2   : > { %v688_v63 = vsub.f32 %v681_v58, %v687_v62 }
 0x3c4   : > { %v689_v0 = vmul.f32 1.442695, %v688_v63 }
 0x3c6   : > { %1369 = vpow2.f32 %v689_v0 }
 0x3c9   : > { %v744_v1 = vpop.xlane.xlu1 %743 }
 0x3ca   : > { %v745_v2 = vsub.f32 %v738_v56, %v744_v1 }
 0x3cc   : > { %v1370_v3 = vpop.eup %1369  ;;  %v746_v4 = vmul.f32 1.442695, %v745_v2 }
 0x3cd   : > { %v691_v6 = vsel %vm665_vm5, %v1370_v3, 0.0 }
 0x3ce   : > { %1371 = vpow2.f32 %v746_v4  ;;  %692 = vadd.xlane.f32.xlu2 %v691_v6  ;;  %v1361_v6 = vld [vmem:[%s1871_s8] ss:$0 sm:$0xff] }
 0x3d4   : > { %v1372_v7 = vpop.eup %1371 }
 0x3d5   : > { %v748_v8 = vsel %vm665_vm5, %v1372_v7, 0.0 }
 0x3d6   : > { %749 = vadd.xlane.f32.xlu1 %v748_v8 }
 0x3e6   : > { %831 = vrot.lane.b32.xlu2 %v1718_v43, %s1493_s25  ;;  %s1108_s25 = sshll.u32 %s511_s28, 4  ;;  %s1109_s25 = int_to_ptr.vmem [resolvable:$true] %s1108_s25 }
 0x3ef   : > { %754 = vrot.lane.b32.xlu1 %v1718_v43, %s1494_s16 }
 0x441   : > { %v693_v9 = vpop.xlane.xlu2 %692 }
 0x442   : > { %1373 = vrcp.f32 %v693_v9 }
 0x448   : > { %v1374_v10 = vpop.eup %1373 }
 0x449   : > { %v695_v11 = vmul.f32 %v1374_v10, %v1370_v3  ;;  %v832_v12 = vpop.permute.xlu2 %831  ;;  %v750_v15 = vpop.xlane.xlu1 %749 }
 0x44a   : > { %1213 = vmatmul.msk.bf16.vlgmr.msrb.gmra.mxu3 %vm665_vm5, %v832_v12  ;;  %1375 = vrcp.f32 %v750_v15 }
 0x44b   : > { %v696_v13 = vpack.c.bf16 %v695_v11, %v695_v11 }
 0x44d   : > { %1208 = vmatmul.msk.bf16.vlgmr.msrb.gmra.mxu1 %vm665_vm5, %v696_v13 }
 0x44e   : > { %929 = vmatpush.bf16.msrb.mxu1 %v1283_v60 }
 0x450   : > { %v1376_v17 = vpop.eup %1375 }
 0x451   : > { %v752_v18 = vmul.f32 %v1376_v17, %v1372_v7 }
 0x452   : > { %930 = vmatpush.bf16.msrb.mxu1 %v1282_v61 }
 0x453   : > { %v753_v21 = vpack.c.bf16 %v752_v18, %v752_v18  ;;  %v1285_v18 = vld [vmem:[%s1872_s9 + $0x8] sm:$0xff] }
 0x45d   : > { %1211 = vmatmul.msk.bf16.vlgmr.msra.gmra.mxu1 %vm665_vm5, %v776_v16 }
 0x461   : > { %v755_v19 = vpop.permute.xlu1 %754 }
 0x462   : > { %v760_v20 = vsel %vm702_vm6, %v755_v19, 0  ;;  %v1293_v19 = vld [vmem:[%s1874_s11 + $0x38] sm:$0xff] }
 0x463   : > { %769 = vmatpush.bf16.msrb.mxu0 %v760_v20  ;;  %1046 = vmatpush.bf16.msra.mxu3 %v1293_v19 }
 0x466   : > { %1210 = vmatmul.msk.bf16.vlgmr.msrb.gmra.mxu0 %vm665_vm5, %v753_v21 }
 0x4ca   : > { %v1745_v22 = vpop.f32.mrf.mxu1 }
 0x4cd   : > { %v850_v23 = vpop.f32.mrf.mxu3 }
 0x4ce   : > { %v854_v24 = vsel %vm665_vm5, %v850_v23, -inf }
 0x4cf   : > { %855 = vmax.xlane.f32.xlu2 %v854_v24  ;;  %v1291_v24 = vld [vmem:[%s1874_s11 + $0x28] sm:$0xff] }
 0x4d2   : > { %v717_v25 = vpop.f32.mrf.mxu1 }
 0x4d3   : > { %v1290_v25 = vld [vmem:[%s1874_s11 + $0x20] sm:$0xff] }
 0x4d5   : > { %v852_v26 = vpop.f32.mrf.mxu3 }
 0x4da   : > { %v794_v27 = vpop.f32.mrf.mxu1 }
 0x4db   : > { %v798_v28 = vsel %vm665_vm5, %v794_v27, -inf }
 0x4dc   : > { %799 = vmax.xlane.f32.xlu0 %v798_v28 }
 0x4e2   : > { %v796_v29 = vpop.f32.mrf.mxu1 }
 0x4e3   : > { %v771_v30 = vpop.f32.mrf.mxu0 }
 0x4e7   : > { %810 = vrot.lane.b32.xlu2 %v1718_v43, %s1495_s26  ;;  %s1901_s26 = sld [smem:[#allocation14_spill]] }
 0x4eb   : > { %v773_v32 = vpop.f32.mrf.mxu0 }
 0x4ef   : > { %888 = vrot.lane.b32.xlu2 %v771_v30, %s1496_s12  ;;  %v1288_v30 = vld [vmem:[%s1874_s11 + $0x10] sm:$0xff]  ;;  %s1275_s12 = sshll.u32 %s1601_s22, 2  ;;  %s1096_s22 = scalar_lea.sflag [#allocation4], %s1666_s17 }
 0x4f0   : > { %s1106_s27 = scalar_lea.hbm %s1903_s29, %s1275_s12 }
 0x4f1   : > { %s1110_s16 = sshll.u32 %s1106_s27, 4  ;;  %s1111_s16 = int_to_ptr.hbm [resolvable:$true] %s1110_s16 }
 0x542   : > { %v856_v33 = vpop.xlane.xlu2 %855 }
 0x543   : > { %v857_v35 = vsub.f32 %v850_v23, %v856_v33 }
 0x545   : > { %v858_v36 = vmul.f32 1.442695, %v857_v35 }
 0x547   : > { %1377 = vpow2.f32 %v858_v36 }
 0x54a   : > { %v811_v37 = vpop.permute.xlu2 %810 }
 0x54b   : > { %v816_v38 = vsel %vm702_vm6, %v811_v37, 0 }
 0x54c   : > { %825 = vmatpush.bf16.msrb.mxu2 %v816_v38 }
 0x54d   : > { %v1378_v39 = vpop.eup %1377 }
 0x54e   : > { %v860_v40 = vsel %vm665_vm5, %v1378_v39, 0.0 }
 0x54f   : > { %v800_v41 = vpop.xlane.xlu0 %799  ;;  %861 = vadd.xlane.f32.xlu0 %v860_v40  ;;  %v1287_v40 = vld [vmem:[%s1874_s11 + $0x8] sm:$0xff] }
 0x550   : > { %v801_v42 = vsub.f32 %v794_v27, %v800_v41  ;;  %986 = vmatpush.bf16.msra.mxu2 %v1285_v18  ;;  %v1286_v41 = vld [vmem:[%s1874_s11] sm:$0xff] }
 0x552   : > { %v802_v44 = vmul.f32 1.442695, %v801_v42  ;;  %v889_v62 = vpop.permute.xlu2 %888  ;;  %v1295_v42 = vld [vmem:[%s1876_s13 + $0x8] sm:$0xff] }
 0x553   : > { %v899_v63 = vsel %vm665_vm5, %v1745_v22, %v889_v62  ;;  %v1292_v22 = vld [vmem:[%s1874_s11 + $0x30] sm:$0xff] }
 0x554   : > { %1379 = vpow2.f32 %v802_v44  ;;  %1047 = vmatpush.bf16.msra.mxu3 %v1292_v22 }
 0x558   : > { %1048 = vmatpush.bf16.msra.mxu3 %v1291_v24 }
 0x55a   : > { %v1380_v45 = vpop.eup %1379 }
 0x55b   : > { %v804_v46 = vsel %vm665_vm5, %v1380_v45, 0.0 }
 0x55c   : > { %805 = vadd.xlane.f32.xlu1 %v804_v46  ;;  %1049 = vmatpush.bf16.msra.mxu3 %v1290_v25 }
 0x563   : > { %866 = vrot.lane.b32.xlu0 %v1718_v43, %s1497_s14 }
 0x5c2   : > { %v862_v47 = vpop.xlane.xlu0 %861 }
 0x5c3   : > { %1381 = vrcp.f32 %v862_v47 }
 0x5c9   : > { %v1382_v49 = vpop.eup %1381 }
 0x5ca   : > { %v864_v50 = vmul.f32 %v1382_v49, %v1378_v39  ;;  %v1363_v49 = vld [vmem:[%s1901_s26] ss:$0 sm:$0xff]  ;;  %s1431_s26 = sshra.s32 %s1111_s16, 4  ;;  %s1432_s26 = int_to_ptr.hbm [resolvable:$true] %s1431_s26 }
 0x5cb   : > { %s1433_s14 = scalar_lea.hbm %s1432_s26, 4  ;;  %p1438_p0 = scmp.lt.s32.totalorder %s1432_s26, %s1903_s29 }
 0x5cc   : > { %v865_v55 = vpack.c.bf16 %v864_v50, %v864_v50  ;;  %p1434_p6 = scmp.ne.s32.totalorder %s1432_s26, %s1433_s14 }
 0x5ce   : > { %p1435_p9 = pnand %p1434_p6, %p1630_p11 }
 0x5cf   : > { %v806_v48 = vpop.xlane.xlu1 %805 }
 0x5d0   : > { %1383 = vrcp.f32 %v806_v48  ;;  %v1294_v48 = vld [vmem:[%s1876_s13] sm:$0xff]  ;;  %p1436_p13 = pneg %p1435_p9 }
 0x5d5   : > { %v867_v51 = vpop.permute.xlu0 %866 }
 0x5d6   : > { %v1384_v52 = vpop.eup %1383  ;;  %v872_v53 = vsel %vm702_vm6, %v867_v51, 0 }
 0x5d7   : > { %v808_v54 = vmul.f32 %v1384_v52, %v1380_v45  ;;  %881 = vmatpush.bf16.msra.mxu0 %v872_v53 }
 0x5d9   : > { %v809_v56 = vpack.c.bf16 %v808_v54, %v808_v54 }
 0x5da   : > { %1214 = vmatmul.msk.bf16.vlgmr.msra.gmra.mxu0 %vm665_vm5, %v865_v55 }
 0x5db   : > { %1212 = vmatmul.msk.bf16.vlgmr.msrb.gmra.mxu2 %vm665_vm5, %v809_v56  ;;  %1086 = vmatpush.bf16.msrb.mxu0 %v1295_v42 }
 0x5df   : > { %1087 = vmatpush.bf16.msrb.mxu0 %v1294_v48 }
 0x657   : > { %v883_v57 = vpop.f32.mrf.mxu0 }
 0x658   : > { %896 = vrot.lane.b32.xlu2 %v883_v57, %s1498_s15 }
 0x65e   : > { %v827_v43 = vpop.f32.mrf.mxu2 }
 0x65f   : > { %v885_v58 = vpop.f32.mrf.mxu0  ;;  %892 = vrot.lane.b32.xlu0 %v827_v43, %s1499_s20  ;;  %s1902_s20 = sld [smem:[#allocation15_spill]] }
 0x665   : > { %v1364_v56 = vld [vmem:[%s1902_s20] ss:$0 sm:$0xff]  ;;  %s1437_s20 = scalar_lea.hbm %s1903_s29, 8 }
 0x666   : > { %v829_v59 = vpop.f32.mrf.mxu2  ;;  %p1439_p1 = scmp.lt.s32.totalorder %s1437_s20, %s1433_s14 }
 0x668   : > { %p1440_p3 = por %p1439_p1, %p1438_p0 }
 0x66a   : > { %p1441_p4 = pnand %p1440_p3, %p1436_p13 }
 0x6b2   : > { %v897_v1 = vpop.permute.xlu2 %896 }
 0x6d1   : > { %v893_v0 = vpop.permute.xlu0 %892 }
 0x6d2   : > { %v901_v2 = vsel %vm900_vm7, %v899_v63, %v893_v0 }
 0x6d3   : > { %v903_v3 = vsel %vm902_vm8, %v901_v2, %v897_v1 }
 0x6d4   : > { %v904_v4 = vpack.c.bf16 %v903_v3, %v903_v3 }
 0x6d6   : > { %1223 = vmatmul.msk.bf16.vlgmr.msrb.gmra.mxu1 %vm573_vm0, %v904_v4 }
 0x753   : > { %v932_v7 = vpop.f32.mrf.mxu1 }
 0x754   : > { %v933_v8 = vadd.f32 %v1361_v6, %v932_v7 }
 0x756   : > { %v1770_v9 = vadd.f32 %v933_v8, %v1686_v5  ;;  %v1284_v5 = vld [vmem:[%s1872_s9] sm:$0xff] }
 0x757   : > { %987 = vmatpush.bf16.msra.mxu2 %v1284_v5 }
 0x758   : > { %v937_v10 = vsel %vm573_vm0, %v1770_v9, 0.0 }
 0x759   : > { %938 = vadd.xlane.f32.xlu0 %v937_v10 }
 0x75b   : > { %v934_v11 = vpop.f32.mrf.mxu1 }
 0x7cc   : > { %v939_v12 = vpop.xlane.xlu0 %938 }
 0x7cd   : > { %v940_v13 = vmul.f32 %v939_v12, %v1690_v14 }
 0x7cf   : > { %v941_v15 = vsub.f32 %v1770_v9, %v940_v13 }
 0x7d1   : > { %v942_v16 = vmul.f32 %v941_v15, %v941_v15 }
 0x7d3   : > { %v943_v17 = vsel %vm573_vm0, %v942_v16, 0.0 }
 0x7d4   : > { %944 = vadd.xlane.f32.xlu1 %v943_v17 }
 0x847   : > { %v945_v20 = vpop.xlane.xlu1 %944 }
 0x848   : > { %v946_v21 = vmul.f32 %v945_v20, %v1690_v14  ;;  %v1289_v14 = vld [vmem:[%s1874_s11 + $0x18] sm:$0xff] }
 0x849   : > { %1050 = vmatpush.bf16.msra.mxu3 %v1289_v14 }
 0x84a   : > { %v947_v23 = vadd.f32 1e-05, %v946_v21 }
 0x84c   : > { %1385 = vrsqrt.f32 %v947_v23  ;;  %vm954_vm10 = vweird.f32 %v947_v23 }
 0x84d   : > { %1051 = vmatpush.bf16.msra.mxu3 %v1288_v30 }
 0x851   : > { %1052 = vmatpush.bf16.msra.mxu3 %v1287_v40 }
 0x852   : > { %v1386_v26 = vpop.eup %1385 }
 0x853   : > { %v949_v27 = vmul.f32 %v1386_v26, %v947_v23  ;;  %vm955_vm9 = vweird.f32 %v1386_v26 }
 0x854   : > { %vm956_vm11 = vmor %vm954_vm10, %vm955_vm9 }
 0x855   : > { %v950_v28 = vmul.f32 %v1386_v26, %v949_v27  ;;  %1053 = vmatpush.bf16.msra.mxu3 %v1286_v41 }
 0x857   : > { %v951_v29 = vmul.f32 0.5, %v950_v28 }
 0x859   : > { %v952_v32 = vsub.f32 1.5, %v951_v29 }
 0x85b   : > { %v953_v33 = vmul.f32 %v1386_v26, %v952_v32 }
 0x85d   : > { %v957_v35 = vsel %vm956_vm11, %v1386_v26, %v953_v33 }
 0x85e   : > { %v958_v36 = vmul.f32 %v957_v35, %v941_v15 }
 0x860   : > { %v959_v37 = vmul.f32 %v1705_v31, %v958_v36  ;;  %v1362_v31 = vld [vmem:[%s1873_s10] ss:$0 sm:$0xff] }
 0x862   : > { %v960_v38 = vadd.f32 %v1710_v34, %v959_v37 }
 0x864   : > { %v961_v39 = vpack.c.bf16 %v960_v38, %v960_v38 }
 0x866   : > { %1232 = vmatmul.msk.bf16.vlgmr.msra.gmra.mxu2 %vm573_vm0, %v961_v39 }
 0x8e9   : > { %v989_v34 = vpop.f32.mrf.mxu2 }
 0x8ea   : > { %v990_v44 = vadd.f32 %v1362_v31, %v989_v34 }
 0x8ec   : > { %v993_v45 = vmax.f32 %v990_v44, 0.0 }
 0x8ee   : > { %v994_v46 = vpack.c.bf16 %v993_v45, %v993_v45 }
 0x8f0   : > { %1054 = vmatmul.bf16.vlgmr.msra.gmra.mxu3 %v994_v46 }
 0x8f1   : > { %v991_v47 = vpop.f32.mrf.mxu2 }
 0x973   : > { %v1055_v50 = vpop.f32.mrf.mxu3 }
 0x974   : > { %v1056_v51 = vadd.f32 %v1363_v49, %v1055_v50 }
 0x976   : > { %v1059_v52 = vmax.f32 %v1056_v51, 0.0 }
 0x978   : > { %v1060_v53 = vadd.f32 %v1059_v52, %v1770_v9 }
 0x97a   : > { %v1061_v54 = vpack.c.bf16 %v1060_v53, %v1060_v53 }
 0x97b   : > { %v1057_v55 = vpop.f32.mrf.mxu3 }
 0x97c   : > { %1273 = vmatmul.msk.bf16.vlgmr.msrb.gmra.mxu0 %vm573_vm0, %v1061_v54 }
 0x9f9   : > { %v1089_v57 = vpop.f32.mrf.mxu0 }
 0x9fa   : > { %v1090_v43 = vadd.f32 %v1364_v56, %v1089_v57 }
 0x9fc   : > { %v1093_v58 = vpack.c.bf16 %v1090_v43, %v1090_v43 }
 0x9fe   : > { %1094 = vst [vmem:[%s511_s28] sm:$0xf] %v1093_v58 }
 0x9ff   : > { %1444 = shalt.err (!%p1441_p4)
}
 0xa00   : > { %1298 = dma.vmem_to_hbm [thread:$0]  (%p1630_p11), %s1109_s25, 64, %s1111_s16, %s1096_s22  }
 0xa01   : > { %v1091_v59 = vpop.f32.mrf.mxu0 }
 0xa02 PF: > { %s1905_s17 = sld [smem:[#allocation8_spill]]  ;;  %p1907_p7 = scmp.ge.s32.totalorder %s1483_s21, 2 }
 0xa04   : > { %p1305_p5 = pnand %p1907_p7, %p1634_p12 }
 0xa06   : > { %p1306_p8 = pneg %p1305_p5 }
 0xa08   : > { %s1122_s27 = sand.u32 1, %s1905_s17  }
 0xa09   : > { %s1123_s28 = scalar_lea.sflag [#allocation4], %s1122_s27 }
 0xa0a   : > { %1466 = dma.done.wait (%p1306_p8), %s1123_s28, 64  }
 0xa0b   : > { %1468 = vsyncadd (%p1306_p8), %s1123_s28, 4294967232  ;;  %s1908_s21 = sld [smem:[#allocation10_spill]]  ;;  %s1911_s18 = smov %s1475_s19 }
 0xa0c   : > { %s1909_s26 = sld [smem:[#allocation9_spill]] }
 0xa0d   : > { %s1910_s20 = sld [smem:[#allocation11_spill]] }
 0xa11   : > { %p28_p10 = scmp.ge.s32.totalorder %s1908_s21, 4  }
 0xa12   : > { %s1912_s19 = smov %s1909_s26 }
 0xa13   :  { %30 = sbr.rel (!%p28_p10) target bundleno = 9 (0x9), region = 125 }
 0xa18   :  { %1129 = vsyncpa [#allocation3], 1 }
 0xa19   :  { %1131 = vsyncpa [#allocation3 + $0x1], 1 }
 0xa1a   :  { %1132 = vsyncpa [#allocation4], 1 }
 0xa1b   :  { %1134 = vsyncpa [#allocation4 + $0x1], 1 }

</bundles_post_ra>
